<compile_context>
chip_gen: v7x
topology: tpu7x:2x2x1
jax: 0.10.0
libtpu: 0.0.40
codegen_flags: <defaults>
</compile_context>

<pallas_src>
import functools
import math

import jax
import jax.numpy as jnp
from jax import lax
from jax.experimental import pallas as pl
from jax.experimental.pallas import tpu as pltpu

SELU_ALPHA = 1.6732632423543772
SELU_SCALE = 1.0507009873554805
BN_EPS = 1e-5
LN_EPS = 1e-6
INV_SQRT2 = 1.0 / math.sqrt(2.0)


def _selu(x):
    # exp clipped at 0 so the unused branch never produces inf
    return SELU_SCALE * jnp.where(
        x > 0, x, SELU_ALPHA * (jnp.exp(jnp.minimum(x, 0.0)) - 1.0))


def _pair_pool_lanes(h):
    """haar LL over adjacent lanes: out[.., m] = (h[.., 2m] + h[.., 2m+1])/sqrt(2).

    O(N) VPU work instead of an O(N^2) pool-matrix matmul.
    """
    r, n = h.shape
    return jnp.sum(h.reshape(r, n // 2, 2), axis=-1) * INV_SQRT2


def _vmem_limit(need_bytes):
    # explicit scoped-VMEM limit: double-buffered I/O blocks + in-kernel
    # activations, capped with headroom below v7x's 64 MiB physical VMEM.
    return int(min(48 << 20, max(32 << 20, need_bytes)))


def _pick_feature_block(b, l, target_lanes=4096):
    """Whole batches per stage-A grid step.

    bb % 8 == 0 keeps the (2, bb, C_out) key block legal/sublane-dense and
    (bb*L) % 128 == 0 keeps the lane-folded conv blocks 128-aligned; fall back
    to the whole batch (full-dim blocks are always legal) when no tiling fits.
    """
    cands = [bb for bb in range(8, b, 8)
             if b % bb == 0 and (bb * l) % 128 == 0]
    if not cands:
        return b
    good = [bb for bb in cands if bb * l <= target_lanes]
    return max(good) if good else min(cands)


def _pick_attn_block(b, d_model, target_bytes=4 << 20):
    """Whole batches per stage-B grid step (bb % 8 == 0 keeps the (2, bb, Dm)
    input blocks and (bb, Dm/2) output blocks legal and sublane-dense)."""
    cands = [bb for bb in range(8, b, 8) if b % bb == 0]
    if not cands:
        return b
    good = [bb for bb in cands if 2 * bb * d_model * 4 <= target_bytes]
    return max(good) if good else min(cands)


# ----------------------------------------------------------------------------
# Kernel A: conv stack + BN + SELU + haar downsamples + key features
# ----------------------------------------------------------------------------
def feature_kernel(x_ref, w1_ref, w2_ref, wk_ref, bn_ref, val_ref, key_ref, *,
                   c_out, k_taps, pad, seq_len, b_blk):
    # x_ref   : (C_in, N) bf16, N = b_blk * L (whole batch segments on lanes)
    # w1_ref  : (K*C_out, C_in)  bf16 tap-major layer01 weight
    # w2_ref  : (K*C_out, C_out) bf16 tap-major layer02 weight
    # wk_ref  : (C_out, C_in)    bf16 1x1 keep_channel weight
    # bn_ref  : (C_out, 6) f32 columns [s1 b1 s2 b2 sk bk] (folded eval BN)
    # val_ref : (2, b_blk, C_out, Ld) f32  branch 0 = keep_channel, 1 = layer02
    # key_ref : (2, b_blk, C_out) f32      row 0 = max(x_ll), 1 = argmax(l2_ll)
    f32 = jnp.float32
    n = b_blk * seq_len
    ld = seq_len // 2
    x = x_ref[...]

    # conv tap validity masks from iota (no HBM mask input): lane position
    # inside its length-L batch segment.  Built once, reused by both convs.
    pos = lax.broadcasted_iota(jnp.int32, (1, n), 1) % seq_len
    tap_masks = []
    for t in range(k_taps):
        off = t - pad
        tap_masks.append(((pos + off >= 0) & (pos + off < seq_len)).astype(f32))

    def conv_bn_selu(inp16, w_stack, scale, bias):
        # ONE MXU matmul for all taps (bf16 operands, f32 accumulate); tap t's
        # rows are combined with a cheap lane roll + in-segment mask.
        y_all = jnp.dot(w_stack, inp16, preferred_element_type=f32)  # (K*C_out,N)
        acc = jnp.zeros((c_out, n), f32)
        for t in range(k_taps):
            off = t - pad
            # c_out % 8 keeps this sublane slice on (8,128) tile boundaries
            y_t = y_all[t * c_out:(t + 1) * c_out, :]
            if off != 0:
                y_t = jnp.roll(y_t, -off, axis=-1)
            acc = acc + y_t * tap_masks[t]
        return _selu(acc * scale + bias)

    # layer01 / layer02 / layer_keep_channel (elementwise chain stays f32)
    h1 = conv_bn_selu(x, w1_ref[...], bn_ref[:, 0:1], bn_ref[:, 1:2])
    h2 = conv_bn_selu(h1.astype(jnp.bfloat16), w2_ref[...],
                      bn_ref[:, 2:3], bn_ref[:, 3:4])
    hk = _selu(jnp.dot(wk_ref[...], x, preferred_element_type=f32)
               * bn_ref[:, 4:5] + bn_ref[:, 5:6])

    # haar DWT LL downsample: pairwise lane add (pairs never cross segments
    # since every block holds whole even-length segments).
    l2_ll = _pair_pool_lanes(h2)                                   # (C_out, N/2)
    x_ll = _pair_pool_lanes(hk)

    # value, stored directly in the (batch, branch, C_out, Ld) layout stage B
    # consumes (the XLA-side flatten to (2, B, Dm) is a free reshape).
    for bb in range(b_blk):
        lo, hi = bb * ld, (bb + 1) * ld
        val_ref[0, bb] = x_ll[:, lo:hi]
        val_ref[1, bb] = l2_ll[:, lo:hi]

    # key features: per-batch max of x_ll and first-occurrence ARGMAX index of
    # l2_ll (cast to float -- reproduces the reference tuple-unpack quirk).
    # Reading back the just-written value block gives (b_blk, C_out, Ld), so a
    # single lane reduction lands in the (batch, channel) key orientation.
    v0 = val_ref[0]
    v1 = val_ref[1]
    key_ref[0] = jnp.max(v0, axis=-1)
    mval = jnp.max(v1, axis=-1, keepdims=True)
    idx = lax.broadcasted_iota(jnp.int32, v1.shape, 2)
    key_ref[1] = jnp.min(jnp.where(v1 == mval, idx, ld), axis=-1).astype(f32)


def feature_stage(x, w1s, w2s, wk1, bn, *, k_taps, pad):
    b, c_in, l = x.shape
    c_out = wk1.shape[0]
    ld = l // 2
    b_blk = _pick_feature_block(b, l)
    n_blk = b // b_blk

    # batch folded onto the lane axis; bf16 halves the input DMA.
    # TODO(synk): this input transpose is the one remaining XLA relayout; it
    #             could be removed by reading (b_blk, C_in, L) blocks directly.
    x2d = jnp.transpose(x, (1, 0, 2)).reshape(c_in, b * l).astype(jnp.bfloat16)

    kern = functools.partial(feature_kernel, c_out=c_out, k_taps=k_taps,
                             pad=pad, seq_len=l, b_blk=b_blk)
    blk_bytes = (c_in * b_blk * l * 2
                 + 2 * b_blk * c_out * ld * 4
                 + 2 * b_blk * c_out * 4)
    act_bytes = (k_taps + 4) * c_out * b_blk * l * 4
    return pl.pallas_call(
        kern,
        out_shape=(jax.ShapeDtypeStruct((2, b, c_out, ld), jnp.float32),
                   jax.ShapeDtypeStruct((2, b, c_out), jnp.float32)),
        grid=(n_blk,),
        in_specs=[
            pl.BlockSpec((c_in, b_blk * l), lambda i: (0, i)),
            pl.BlockSpec(w1s.shape, lambda i: (0, 0)),
            pl.BlockSpec(w2s.shape, lambda i: (0, 0)),
            pl.BlockSpec(wk1.shape, lambda i: (0, 0)),
            pl.BlockSpec(bn.shape, lambda i: (0, 0)),
        ],
        out_specs=(
            pl.BlockSpec((2, b_blk, c_out, ld), lambda i: (0, i, 0, 0)),
            pl.BlockSpec((2, b_blk, c_out), lambda i: (0, i, 0)),
        ),
        compiler_params=pltpu.CompilerParams(
            dimension_semantics=("parallel",),
            vmem_limit_bytes=_vmem_limit(2 * blk_bytes + act_bytes)),
    )(x2d, w1s, w2s, wk1, bn)


# ----------------------------------------------------------------------------
# Kernel B: MHA (q=value, k=v=key) + residual + LayerNorm + row-sum + layer_pool
# ----------------------------------------------------------------------------
def attention_kernel(val_ref, key_ref, wq_ref, wk_ref, wv_ref, wfc_ref, ln_ref,
                     out_ref, attn_ref, *, n_head, d_k, d_v):
    # val_ref : (2, Bb, Dm) f32   group 0 = keep_channel rows, 1 = layer02 rows
    # key_ref : (2, Bb, C)  f32   group 0 = max keys, 1 = argmax-index keys
    # out_ref : (Bb, Dm/2) f32
    # attn_ref: (Bb, 4*H)  f32    lane-packed [g0j0 | g0j1 | g1j0 | g1j1] x H
    f32 = jnp.float32
    bf16 = jnp.bfloat16
    q0 = val_ref[0]
    q1 = val_ref[1]
    k0 = key_ref[0]
    k1 = key_ref[1]
    hk_dim = n_head * d_k
    hv_dim = n_head * d_v

    # projections (Linear biases are 0 under the reference init).  The big
    # Dm-contraction runs in bf16; the tiny C-contraction k/v projections stay
    # f32 so the integer argmax keys are preserved exactly.  The key is
    # projected ONCE per key row (no replication, no duplicate projections).
    wq = wq_ref[...]
    qp0 = jnp.dot(q0.astype(bf16), wq, preferred_element_type=f32)   # (Bb, H*dk)
    qp1 = jnp.dot(q1.astype(bf16), wq, preferred_element_type=f32)
    kp0 = jnp.dot(k0, wk_ref[...], preferred_element_type=f32)
    kp1 = jnp.dot(k1, wk_ref[...], preferred_element_type=f32)
    vp0 = jnp.dot(k0, wv_ref[...], preferred_element_type=f32)       # (Bb, H*dv)
    vp1 = jnp.dot(k1, wv_ref[...], preferred_element_type=f32)

    # tiny iota-built per-head reduce / broadcast matrices (batch independent).
    di = lax.broadcasted_iota(jnp.int32, (hk_dim, n_head), 0)
    hi = lax.broadcasted_iota(jnp.int32, (hk_dim, n_head), 1)
    head_sum = ((di >= hi * d_k) & (di < (hi + 1) * d_k)).astype(f32)
    hj = lax.broadcasted_iota(jnp.int32, (n_head, hv_dim), 0)
    vj = lax.broadcasted_iota(jnp.int32, (n_head, hv_dim), 1)
    head_bcast = ((vj >= hj * d_v) & (vj < (hj + 1) * d_v)).astype(f32)

    inv_temp = 1.0 / (d_k ** 0.5)
    gamma = ln_ref[0:1, :]
    beta = ln_ref[1:2, :]
    wfc = wfc_ref[...]

    def attend(qp, q_res):
        # per-head scaled dot-product over the 2 key positions (softmax len 2)
        s0 = jnp.dot(qp * kp0, head_sum, preferred_element_type=f32) * inv_temp
        s1 = jnp.dot(qp * kp1, head_sum, preferred_element_type=f32) * inv_temp
        m = jnp.maximum(s0, s1)
        e0 = jnp.exp(s0 - m)
        e1 = jnp.exp(s1 - m)
        denom = e0 + e1
        a0 = e0 / denom                                             # (Bb, H)
        a1 = e1 / denom
        ctx = (jnp.dot(a0, head_bcast, preferred_element_type=f32) * vp0
               + jnp.dot(a1, head_bcast, preferred_element_type=f32) * vp1)
        # fc + residual + LayerNorm (dropout = identity in eval)
        o = jnp.dot(ctx.astype(bf16), wfc, preferred_element_type=f32) + q_res
        mean = jnp.mean(o, axis=-1, keepdims=True)
        var = jnp.mean(jnp.square(o - mean), axis=-1, keepdims=True)
        o = (o - mean) * lax.rsqrt(var + LN_EPS)
        return o * gamma + beta, a0, a1

    o0, a00, a01 = attend(qp0, q0)
    o1, a10, a11 = attend(qp1, q1)

    # sum the 2 rows per batch (leading-axis add, no indicator matmul), then
    # layer_pool = SELU + haar LL over adjacent lanes.
    out_ref[...] = _pair_pool_lanes(_selu(o0 + o1))
    # attn is (B, H, 2, 2) total -- tiny, so the sub-128-lane packed store is
    # negligible in absolute terms.
    attn_ref[...] = jnp.concatenate([a00, a01, a10, a11], axis=-1)


def attention_stage(value3, key3, wq, wk, wv, wfc, ln, *, n_head, d_k, d_v):
    _, b, dm = value3.shape
    c = key3.shape[2]
    b_blk = _pick_attn_block(b, dm)
    n_blk = b // b_blk
    kern = functools.partial(attention_kernel, n_head=n_head, d_k=d_k, d_v=d_v)
    blk_bytes = 2 * b_blk * dm * 4 + 2 * b_blk * c * 4 + b_blk * (dm // 2) * 4
    w_bytes = (wq.size + wfc.size) * 2 + (wk.size + wv.size + ln.size) * 4
    return pl.pallas_call(
        kern,
        out_shape=(jax.ShapeDtypeStruct((b, dm // 2), jnp.float32),
                   jax.ShapeDtypeStruct((b, 4 * n_head), jnp.float32)),
        grid=(n_blk,),
        in_specs=[
            pl.BlockSpec((2, b_blk, dm), lambda i: (0, i, 0)),
            pl.BlockSpec((2, b_blk, c), lambda i: (0, i, 0)),
            pl.BlockSpec(wq.shape, lambda i: (0, 0)),
            pl.BlockSpec(wk.shape, lambda i: (0, 0)),
            pl.BlockSpec(wv.shape, lambda i: (0, 0)),
            pl.BlockSpec(wfc.shape, lambda i: (0, 0)),
            pl.BlockSpec(ln.shape, lambda i: (0, 0)),
        ],
        out_specs=(
            pl.BlockSpec((b_blk, dm // 2), lambda i: (i, 0)),
            pl.BlockSpec((b_blk, 4 * n_head), lambda i: (i, 0)),
        ),
        compiler_params=pltpu.CompilerParams(
            dimension_semantics=("parallel",),
            vmem_limit_bytes=_vmem_limit(
                2 * blk_bytes + w_bytes + 8 * b_blk * dm)),
    )(value3, key3, wq, wk, wv, wfc, ln)


# ----------------------------------------------------------------------------
# Parameter initialization (matches module's init_weights; BN/Dropout in eval)
# ----------------------------------------------------------------------------
def init_params(key, c_in, c_out, ksize, n_head, d_model, d_k, d_v):
    k1, k2, k3, kq, kk, kv, kf = jax.random.split(key, 7)

    def kaiming_fan_out(k, shape):
        # Conv1d weight (C_out, C_in, K); fan_out = C_out * K; gain = sqrt(2)
        std = math.sqrt(2.0 / (shape[0] * shape[2]))
        return jax.random.normal(k, shape, jnp.float32) * std

    def tap_stack(w):
        # (C_out, C_in, K) -> (K*C_out, C_in), tap-major rows
        co, ci, kt = w.shape
        return jnp.transpose(w, (2, 0, 1)).reshape(kt * co, ci)

    w1 = kaiming_fan_out(k1, (c_out, c_in, ksize))
    w2 = kaiming_fan_out(k2, (c_out, c_out, ksize))
    wk1 = kaiming_fan_out(k3, (c_out, c_in, 1))[:, :, 0]

    # Three DISTINCT BatchNorm1d layers, folded for eval:
    # running_mean=0, running_var=1, gamma=1, beta=0 -> scale=1/sqrt(1+eps)
    scale = jnp.full((c_out,), 1.0 / math.sqrt(1.0 + BN_EPS), jnp.float32)
    zero = jnp.zeros((c_out,), jnp.float32)
    bn = jnp.stack([scale, zero, scale, zero, scale, zero], axis=1)  # (C_out, 6)

    lin = lambda k, shp: jax.random.normal(k, shp, jnp.float32) * 1e-3
    d_kv_in = c_out   # feature dim of `key` in the reference forward
    # TODO(synk): the canonical MHA uses Linear(d_model, ...) for k/v, which only
    #             type-checks when C_out == d_model; we follow the actual shapes.
    return dict(
        # big matmul operands held in bf16 (f32 accumulate inside the kernels)
        w1s=tap_stack(w1).astype(jnp.bfloat16),
        w2s=tap_stack(w2).astype(jnp.bfloat16),
        wk1=wk1.astype(jnp.bfloat16),
        bn=bn,
        wq=lin(kq, (d_model, n_head * d_k)).astype(jnp.bfloat16),
        wk=lin(kk, (d_kv_in, n_head * d_k)),
        wv=lin(kv, (d_kv_in, n_head * d_v)),
        wfc=lin(kf, (n_head * d_v, d_model)).astype(jnp.bfloat16),
        ln=jnp.concatenate([jnp.ones((1, d_model), jnp.float32),
                            jnp.zeros((1, d_model), jnp.float32)], axis=0),
    )


# ----------------------------------------------------------------------------
# Full forward pass: two fused Pallas kernels + only FREE reshapes in between
# ----------------------------------------------------------------------------
def residual_attention_forward(x, params, n_head, d_k, d_v):
    b, c_in, l = x.shape
    c_out = params["wk1"].shape[0]
    k_taps = params["w1s"].shape[0] // c_out
    pad = (k_taps - 1) // 2            # stride fixed to 1 (see header)
    ld = l // 2
    d_model = params["wq"].shape[0]
    assert d_model == c_out * ld, "d_model must equal C_out * (L // 2)"

    # Stage A: conv stack + haar downsamples + key features
    val_raw, key_raw = feature_stage(x, params["w1s"], params["w2s"],
                                     params["wk1"], params["bn"],
                                     k_taps=k_taps, pad=pad)

    # contiguous (free) reshape only: (2, B, C_out, Ld) -> (2, B, Dm)
    value3 = val_raw.reshape(2, b, c_out * ld)

    # Stage B: MHA + residual + LayerNorm + row-sum + layer_pool
    out_flat, attn_raw = attention_stage(value3, key_raw, params["wq"],
                                         params["wk"], params["wv"],
                                         params["wfc"], params["ln"],
                                         n_head=n_head, d_k=d_k, d_v=d_v)

    out = out_flat.reshape(b, c_out, ld // 2)                        # (B, C, L/4)
    attn = attn_raw.reshape(b, 2, 2, n_head).transpose(0, 3, 1, 2)   # (B, H, 2, 2)
    return out, attn


if __name__ == "__main__":
    # Small, shape-consistent configuration
    B, C_IN, C_OUT, L = 2, 4, 8, 16
    KSIZE = 3                          # stride=1, padding=(k-1)//2 (see header)
    N_HEAD, D_K, D_V = 2, 16, 16
    D_MODEL = C_OUT * (L // 2)         # = 64, dim of the flattened value rows

    root = jax.random.PRNGKey(0)
    kx, kp = jax.random.split(root)
    x = jax.random.normal(kx, (B, C_IN, L), jnp.float32)
    params = init_params(kp, C_IN, C_OUT, KSIZE, N_HEAD, D_MODEL, D_K, D_V)

    fwd = jax.jit(functools.partial(residual_attention_forward,
                                    n_head=N_HEAD, d_k=D_K, d_v=D_V))
    out, attn = fwd(x, params)
    jax.block_until_ready((out, attn))

    assert out.shape == (B, C_OUT, L // 4), out.shape
    assert attn.shape == (B, N_HEAD, 2, 2), attn.shape
    assert bool(jnp.all(jnp.isfinite(out))) and bool(jnp.all(jnp.isfinite(attn)))
    print("KERNEL_OK")
</pallas_src>

<mosaic_0001>
module attributes {stable_mosaic.version = 11 : i64} {
  func.func @feature_kernel(%arg0: i32, %arg1: memref<4x32xbf16, #tpu.memory_space<vmem>>, %arg2: memref<24x4xbf16, #tpu.memory_space<vmem>>, %arg3: memref<24x8xbf16, #tpu.memory_space<vmem>>, %arg4: memref<8x4xbf16, #tpu.memory_space<vmem>>, %arg5: memref<8x6xf32, #tpu.memory_space<vmem>>, %arg6: memref<2x2x8x8xf32, #tpu.memory_space<vmem>>, %arg7: memref<2x2x8xf32, #tpu.memory_space<vmem>>) attributes {dimension_semantics = [#tpu.dimension_semantics<parallel>], iteration_bounds = array<i64: 1>, scalar_prefetch = 0 : i64, scratch_operands = 0 : i64, tpu.core_type = #tpu.core_type<tc>, window_params = [{transform_indices = @transform_0, window_bounds = array<i64: 4, 32>}, {pipeline_mode = #tpu.pipeline_mode<synchronous>, transform_indices = @transform_1, window_bounds = array<i64: 24, 4>}, {pipeline_mode = #tpu.pipeline_mode<synchronous>, transform_indices = @transform_2, window_bounds = array<i64: 24, 8>}, {pipeline_mode = #tpu.pipeline_mode<synchronous>, transform_indices = @transform_3, window_bounds = array<i64: 8, 4>}, {pipeline_mode = #tpu.pipeline_mode<synchronous>, transform_indices = @transform_4, window_bounds = array<i64: 8, 6>}, {transform_indices = @transform_5, window_bounds = array<i64: 2, 2, 8, 8>}, {transform_indices = @transform_6, window_bounds = array<i64: 2, 2, 8>}]} {
    %c0 = arith.constant 0 : index
    %c0_0 = arith.constant 0 : index
    %0 = vector.load %arg1[%c0, %c0_0] : memref<4x32xbf16, #tpu.memory_space<vmem>>, vector<4x32xbf16>
    %1 = tpu.iota {dimensions = array<i32: 1>} : vector<1x32xi32>
    %c16_i32 = arith.constant 16 : i32
    %c0_i32 = arith.constant 0 : i32
    %2 = arith.cmpi eq, %c16_i32, %c0_i32 : i32
    %c1_i32 = arith.constant 1 : i32
    %3 = arith.select %2, %c1_i32, %c16_i32 : i32
    %4 = vector.broadcast %3 : i32 to vector<1x32xi32>
    %5 = arith.remsi %1, %4 : vector<1x32xi32>
    %c0_i32_1 = arith.constant 0 : i32
    %6 = vector.broadcast %c0_i32_1 : i32 to vector<1x32xi32>
    %7 = arith.cmpi ne, %5, %6 : vector<1x32xi32>
    %c0_i32_2 = arith.constant 0 : i32
    %8 = vector.broadcast %c0_i32_2 : i32 to vector<1x32xi32>
    %9 = arith.cmpi slt, %5, %8 : vector<1x32xi32>
    %c0_i32_3 = arith.constant 0 : i32
    %10 = arith.cmpi slt, %3, %c0_i32_3 : i32
    %11 = vector.broadcast %10 : i1 to vector<1x32xi1>
    %12 = vector.broadcast %11 : vector<1x32xi1> to vector<1x32xi1>
    %13 = arith.xori %9, %12 : vector<1x32xi1>
    %14 = arith.andi %13, %7 : vector<1x32xi1>
    %15 = vector.broadcast %3 : i32 to vector<1x32xi32>
    %16 = arith.addi %5, %15 : vector<1x32xi32>
    %17 = arith.select %14, %16, %5 : vector<1x32xi1>, vector<1x32xi32>
    %c-1_i32 = arith.constant -1 : i32
    %18 = vector.broadcast %c-1_i32 : i32 to vector<1x32xi32>
    %19 = arith.addi %17, %18 : vector<1x32xi32>
    %c0_i32_4 = arith.constant 0 : i32
    %20 = vector.broadcast %c0_i32_4 : i32 to vector<1x32xi32>
    %21 = arith.cmpi sge, %19, %20 : vector<1x32xi32>
    %c-1_i32_5 = arith.constant -1 : i32
    %22 = vector.broadcast %c-1_i32_5 : i32 to vector<1x32xi32>
    %23 = arith.addi %17, %22 : vector<1x32xi32>
    %c16_i32_6 = arith.constant 16 : i32
    %24 = vector.broadcast %c16_i32_6 : i32 to vector<1x32xi32>
    %25 = arith.cmpi slt, %23, %24 : vector<1x32xi32>
    %26 = arith.andi %21, %25 : vector<1x32xi1>
    %27 = arith.extui %26 : vector<1x32xi1> to vector<1x32xi32>
    %28 = arith.sitofp %27 : vector<1x32xi32> to vector<1x32xf32>
    %c0_i32_7 = arith.constant 0 : i32
    %29 = vector.broadcast %c0_i32_7 : i32 to vector<1x32xi32>
    %30 = arith.addi %17, %29 : vector<1x32xi32>
    %c0_i32_8 = arith.constant 0 : i32
    %31 = vector.broadcast %c0_i32_8 : i32 to vector<1x32xi32>
    %32 = arith.cmpi sge, %30, %31 : vector<1x32xi32>
    %c0_i32_9 = arith.constant 0 : i32
    %33 = vector.broadcast %c0_i32_9 : i32 to vector<1x32xi32>
    %34 = arith.addi %17, %33 : vector<1x32xi32>
    %c16_i32_10 = arith.constant 16 : i32
    %35 = vector.broadcast %c16_i32_10 : i32 to vector<1x32xi32>
    %36 = arith.cmpi slt, %34, %35 : vector<1x32xi32>
    %37 = arith.andi %32, %36 : vector<1x32xi1>
    %38 = arith.extui %37 : vector<1x32xi1> to vector<1x32xi32>
    %39 = arith.sitofp %38 : vector<1x32xi32> to vector<1x32xf32>
    %c1_i32_11 = arith.constant 1 : i32
    %40 = vector.broadcast %c1_i32_11 : i32 to vector<1x32xi32>
    %41 = arith.addi %17, %40 : vector<1x32xi32>
    %c0_i32_12 = arith.constant 0 : i32
    %42 = vector.broadcast %c0_i32_12 : i32 to vector<1x32xi32>
    %43 = arith.cmpi sge, %41, %42 : vector<1x32xi32>
    %c1_i32_13 = arith.constant 1 : i32
    %44 = vector.broadcast %c1_i32_13 : i32 to vector<1x32xi32>
    %45 = arith.addi %17, %44 : vector<1x32xi32>
    %c16_i32_14 = arith.constant 16 : i32
    %46 = vector.broadcast %c16_i32_14 : i32 to vector<1x32xi32>
    %47 = arith.cmpi slt, %45, %46 : vector<1x32xi32>
    %48 = arith.andi %43, %47 : vector<1x32xi1>
    %49 = arith.extui %48 : vector<1x32xi1> to vector<1x32xi32>
    %50 = arith.sitofp %49 : vector<1x32xi32> to vector<1x32xf32>
    %c0_15 = arith.constant 0 : index
    %c0_16 = arith.constant 0 : index
    %51 = vector.load %arg2[%c0_15, %c0_16] : memref<24x4xbf16, #tpu.memory_space<vmem>>, vector<24x4xbf16>
    %c0_17 = arith.constant 0 : index
    %c0_18 = arith.constant 0 : index
    %52 = vector.load %arg5[%c0_17, %c0_18] : memref<8x6xf32, #tpu.memory_space<vmem>>, vector<8x1xf32>
    %c0_19 = arith.constant 0 : index
    %c1 = arith.constant 1 : index
    %53 = vector.load %arg5[%c0_19, %c1] : memref<8x6xf32, #tpu.memory_space<vmem>>, vector<8x1xf32>
    %cst = arith.constant dense<0.000000e+00> : vector<24x32xf32>
    %54 = tpu.matmul %51, %0, %cst {dimension_numbers = #tpu.dot_dimension_numbers<[1], [0], [0], [1], [0, 0, 1, 1], [], []>} : vector<24x4xbf16>, vector<4x32xbf16>, vector<24x32xf32> -> vector<24x32xf32>
    %cst_20 = arith.constant 0.000000e+00 : f32
    %55 = vector.broadcast %cst_20 : f32 to vector<8x32xf32>
    %56 = vector.extract_strided_slice %54 {offsets = [0, 0], sizes = [8, 32], strides = [1, 1]} : vector<24x32xf32> to vector<8x32xf32>
    %57 = vector.extract_strided_slice %56 {offsets = [0, 31], sizes = [8, 1], strides = [1, 1]} : vector<8x32xf32> to vector<8x1xf32>
    %58 = vector.extract_strided_slice %56 {offsets = [0, 0], sizes = [8, 31], strides = [1, 1]} : vector<8x32xf32> to vector<8x31xf32>
    %59 = tpu.concatenate %57, %58 in 1 : vector<8x1xf32>, vector<8x31xf32> -> vector<8x32xf32>
    %60 = vector.broadcast %28 : vector<1x32xf32> to vector<8x32xf32>
    %61 = arith.mulf %59, %60 : vector<8x32xf32>
    %62 = arith.addf %55, %61 : vector<8x32xf32>
    %63 = vector.extract_strided_slice %54 {offsets = [8, 0], sizes = [8, 32], strides = [1, 1]} : vector<24x32xf32> to vector<8x32xf32>
    %64 = vector.broadcast %39 : vector<1x32xf32> to vector<8x32xf32>
    %65 = arith.mulf %63, %64 : vector<8x32xf32>
    %66 = arith.addf %62, %65 : vector<8x32xf32>
    %67 = vector.extract_strided_slice %54 {offsets = [16, 0], sizes = [8, 32], strides = [1, 1]} : vector<24x32xf32> to vector<8x32xf32>
    %68 = vector.extract_strided_slice %67 {offsets = [0, 1], sizes = [8, 31], strides = [1, 1]} : vector<8x32xf32> to vector<8x31xf32>
    %69 = vector.extract_strided_slice %67 {offsets = [0, 0], sizes = [8, 1], strides = [1, 1]} : vector<8x32xf32> to vector<8x1xf32>
    %70 = tpu.concatenate %68, %69 in 1 : vector<8x31xf32>, vector<8x1xf32> -> vector<8x32xf32>
    %71 = vector.broadcast %50 : vector<1x32xf32> to vector<8x32xf32>
    %72 = arith.mulf %70, %71 : vector<8x32xf32>
    %73 = arith.addf %66, %72 : vector<8x32xf32>
    %74 = vector.broadcast %52 : vector<8x1xf32> to vector<8x32xf32>
    %75 = arith.mulf %73, %74 : vector<8x32xf32>
    %76 = vector.broadcast %53 : vector<8x1xf32> to vector<8x32xf32>
    %77 = arith.addf %75, %76 : vector<8x32xf32>
    %cst_21 = arith.constant 0.000000e+00 : f32
    %78 = vector.broadcast %cst_21 : f32 to vector<8x32xf32>
    %79 = arith.cmpf ogt, %77, %78 : vector<8x32xf32>
    %cst_22 = arith.constant 0.000000e+00 : f32
    %80 = vector.broadcast %cst_22 : f32 to vector<8x32xf32>
    %81 = arith.minimumf %77, %80 : vector<8x32xf32>
    %82 = math.exp %81 : vector<8x32xf32>
    %cst_23 = arith.constant 1.000000e+00 : f32
    %83 = vector.broadcast %cst_23 : f32 to vector<8x32xf32>
    %84 = arith.subf %82, %83 : vector<8x32xf32>
    %cst_24 = arith.constant 1.67326319 : f32
    %85 = vector.broadcast %cst_24 : f32 to vector<8x32xf32>
    %86 = arith.mulf %85, %84 : vector<8x32xf32>
    %87 = arith.select %79, %77, %86 : vector<8x32xi1>, vector<8x32xf32>
    %cst_25 = arith.constant 1.05070102 : f32
    %88 = vector.broadcast %cst_25 : f32 to vector<8x32xf32>
    %89 = arith.mulf %88, %87 : vector<8x32xf32>
    %90 = arith.truncf %89 : vector<8x32xf32> to vector<8x32xbf16>
    %c0_26 = arith.constant 0 : index
    %c0_27 = arith.constant 0 : index
    %91 = vector.load %arg3[%c0_26, %c0_27] : memref<24x8xbf16, #tpu.memory_space<vmem>>, vector<24x8xbf16>
    %c0_28 = arith.constant 0 : index
    %c2 = arith.constant 2 : index
    %92 = vector.load %arg5[%c0_28, %c2] : memref<8x6xf32, #tpu.memory_space<vmem>>, vector<8x1xf32>
    %c0_29 = arith.constant 0 : index
    %c3 = arith.constant 3 : index
    %93 = vector.load %arg5[%c0_29, %c3] : memref<8x6xf32, #tpu.memory_space<vmem>>, vector<8x1xf32>
    %cst_30 = arith.constant dense<0.000000e+00> : vector<24x32xf32>
    %94 = tpu.matmul %91, %90, %cst_30 {dimension_numbers = #tpu.dot_dimension_numbers<[1], [0], [0], [1], [0, 0, 1, 1], [], []>} : vector<24x8xbf16>, vector<8x32xbf16>, vector<24x32xf32> -> vector<24x32xf32>
    %cst_31 = arith.constant 0.000000e+00 : f32
    %95 = vector.broadcast %cst_31 : f32 to vector<8x32xf32>
    %96 = vector.extract_strided_slice %94 {offsets = [0, 0], sizes = [8, 32], strides = [1, 1]} : vector<24x32xf32> to vector<8x32xf32>
    %97 = vector.extract_strided_slice %96 {offsets = [0, 31], sizes = [8, 1], strides = [1, 1]} : vector<8x32xf32> to vector<8x1xf32>
    %98 = vector.extract_strided_slice %96 {offsets = [0, 0], sizes = [8, 31], strides = [1, 1]} : vector<8x32xf32> to vector<8x31xf32>
    %99 = tpu.concatenate %97, %98 in 1 : vector<8x1xf32>, vector<8x31xf32> -> vector<8x32xf32>
    %100 = vector.broadcast %28 : vector<1x32xf32> to vector<8x32xf32>
    %101 = arith.mulf %99, %100 : vector<8x32xf32>
    %102 = arith.addf %95, %101 : vector<8x32xf32>
    %103 = vector.extract_strided_slice %94 {offsets = [8, 0], sizes = [8, 32], strides = [1, 1]} : vector<24x32xf32> to vector<8x32xf32>
    %104 = vector.broadcast %39 : vector<1x32xf32> to vector<8x32xf32>
    %105 = arith.mulf %103, %104 : vector<8x32xf32>
    %106 = arith.addf %102, %105 : vector<8x32xf32>
    %107 = vector.extract_strided_slice %94 {offsets = [16, 0], sizes = [8, 32], strides = [1, 1]} : vector<24x32xf32> to vector<8x32xf32>
    %108 = vector.extract_strided_slice %107 {offsets = [0, 1], sizes = [8, 31], strides = [1, 1]} : vector<8x32xf32> to vector<8x31xf32>
    %109 = vector.extract_strided_slice %107 {offsets = [0, 0], sizes = [8, 1], strides = [1, 1]} : vector<8x32xf32> to vector<8x1xf32>
    %110 = tpu.concatenate %108, %109 in 1 : vector<8x31xf32>, vector<8x1xf32> -> vector<8x32xf32>
    %111 = vector.broadcast %50 : vector<1x32xf32> to vector<8x32xf32>
    %112 = arith.mulf %110, %111 : vector<8x32xf32>
    %113 = arith.addf %106, %112 : vector<8x32xf32>
    %114 = vector.broadcast %92 : vector<8x1xf32> to vector<8x32xf32>
    %115 = arith.mulf %113, %114 : vector<8x32xf32>
    %116 = vector.broadcast %93 : vector<8x1xf32> to vector<8x32xf32>
    %117 = arith.addf %115, %116 : vector<8x32xf32>
    %cst_32 = arith.constant 0.000000e+00 : f32
    %118 = vector.broadcast %cst_32 : f32 to vector<8x32xf32>
    %119 = arith.cmpf ogt, %117, %118 : vector<8x32xf32>
    %cst_33 = arith.constant 0.000000e+00 : f32
    %120 = vector.broadcast %cst_33 : f32 to vector<8x32xf32>
    %121 = arith.minimumf %117, %120 : vector<8x32xf32>
    %122 = math.exp %121 : vector<8x32xf32>
    %cst_34 = arith.constant 1.000000e+00 : f32
    %123 = vector.broadcast %cst_34 : f32 to vector<8x32xf32>
    %124 = arith.subf %122, %123 : vector<8x32xf32>
    %cst_35 = arith.constant 1.67326319 : f32
    %125 = vector.broadcast %cst_35 : f32 to vector<8x32xf32>
    %126 = arith.mulf %125, %124 : vector<8x32xf32>
    %127 = arith.select %119, %117, %126 : vector<8x32xi1>, vector<8x32xf32>
    %cst_36 = arith.constant 1.05070102 : f32
    %128 = vector.broadcast %cst_36 : f32 to vector<8x32xf32>
    %129 = arith.mulf %128, %127 : vector<8x32xf32>
    %c0_37 = arith.constant 0 : index
    %c0_38 = arith.constant 0 : index
    %130 = vector.load %arg4[%c0_37, %c0_38] : memref<8x4xbf16, #tpu.memory_space<vmem>>, vector<8x4xbf16>
    %cst_39 = arith.constant dense<0.000000e+00> : vector<8x32xf32>
    %131 = tpu.matmul %130, %0, %cst_39 {dimension_numbers = #tpu.dot_dimension_numbers<[1], [0], [0], [1], [0, 0, 1, 1], [], []>} : vector<8x4xbf16>, vector<4x32xbf16>, vector<8x32xf32> -> vector<8x32xf32>
    %c0_40 = arith.constant 0 : index
    %c4 = arith.constant 4 : index
    %132 = vector.load %arg5[%c0_40, %c4] : memref<8x6xf32, #tpu.memory_space<vmem>>, vector<8x1xf32>
    %133 = vector.broadcast %132 : vector<8x1xf32> to vector<8x32xf32>
    %134 = arith.mulf %131, %133 : vector<8x32xf32>
    %c0_41 = arith.constant 0 : index
    %c5 = arith.constant 5 : index
    %135 = vector.load %arg5[%c0_41, %c5] : memref<8x6xf32, #tpu.memory_space<vmem>>, vector<8x1xf32>
    %136 = vector.broadcast %135 : vector<8x1xf32> to vector<8x32xf32>
    %137 = arith.addf %134, %136 : vector<8x32xf32>
    %cst_42 = arith.constant 0.000000e+00 : f32
    %138 = vector.broadcast %cst_42 : f32 to vector<8x32xf32>
    %139 = arith.cmpf ogt, %137, %138 : vector<8x32xf32>
    %cst_43 = arith.constant 0.000000e+00 : f32
    %140 = vector.broadcast %cst_43 : f32 to vector<8x32xf32>
    %141 = arith.minimumf %137, %140 : vector<8x32xf32>
    %142 = math.exp %141 : vector<8x32xf32>
    %cst_44 = arith.constant 1.000000e+00 : f32
    %143 = vector.broadcast %cst_44 : f32 to vector<8x32xf32>
    %144 = arith.subf %142, %143 : vector<8x32xf32>
    %cst_45 = arith.constant 1.67326319 : f32
    %145 = vector.broadcast %cst_45 : f32 to vector<8x32xf32>
    %146 = arith.mulf %145, %144 : vector<8x32xf32>
    %147 = arith.select %139, %137, %146 : vector<8x32xi1>, vector<8x32xf32>
    %cst_46 = arith.constant 1.05070102 : f32
    %148 = vector.broadcast %cst_46 : f32 to vector<8x32xf32>
    %149 = arith.mulf %148, %147 : vector<8x32xf32>
    %150 = vector.shape_cast %129 : vector<8x32xf32> to vector<8x16x2xf32>
    %cst_47 = arith.constant dense<0.000000e+00> : vector<8x16xf32>
    %151 = vector.multi_reduction <add>, %150, %cst_47 [2] : vector<8x16x2xf32> to vector<8x16xf32>
    %cst_48 = arith.constant 0.707106769 : f32
    %152 = vector.broadcast %cst_48 : f32 to vector<8x16xf32>
    %153 = arith.mulf %151, %152 : vector<8x16xf32>
    %154 = vector.shape_cast %149 : vector<8x32xf32> to vector<8x16x2xf32>
    %cst_49 = arith.constant dense<0.000000e+00> : vector<8x16xf32>
    %155 = vector.multi_reduction <add>, %154, %cst_49 [2] : vector<8x16x2xf32> to vector<8x16xf32>
    %cst_50 = arith.constant 0.707106769 : f32
    %156 = vector.broadcast %cst_50 : f32 to vector<8x16xf32>
    %157 = arith.mulf %155, %156 : vector<8x16xf32>
    %158 = vector.extract_strided_slice %157 {offsets = [0, 0], sizes = [8, 8], strides = [1, 1]} : vector<8x16xf32> to vector<8x8xf32>
    %c0_51 = arith.constant 0 : index
    %c0_52 = arith.constant 0 : index
    %c0_53 = arith.constant 0 : index
    %c0_54 = arith.constant 0 : index
    %159 = vector.load %arg6[%c0_51, %c0_52, %c0_53, %c0_54] : memref<2x2x8x8xf32, #tpu.memory_space<vmem>>, vector<1x1x8x8xf32>
    %160 = vector.shape_cast %159 : vector<1x1x8x8xf32> to vector<8x8xf32>
    %161 = vector.shape_cast %158 : vector<8x8xf32> to vector<1x1x8x8xf32>
    tpu.vector_store %arg6[%c0_51, %c0_52, %c0_53, %c0_54], %161 {strides = array<i32>} : memref<2x2x8x8xf32, #tpu.memory_space<vmem>>, vector<1x1x8x8xf32>,
    %162 = vector.extract_strided_slice %153 {offsets = [0, 0], sizes = [8, 8], strides = [1, 1]} : vector<8x16xf32> to vector<8x8xf32>
    %c1_55 = arith.constant 1 : index
    %c0_56 = arith.constant 0 : index
    %c0_57 = arith.constant 0 : index
    %c0_58 = arith.constant 0 : index
    %163 = vector.load %arg6[%c1_55, %c0_56, %c0_57, %c0_58] : memref<2x2x8x8xf32, #tpu.memory_space<vmem>>, vector<1x1x8x8xf32>
    %164 = vector.shape_cast %163 : vector<1x1x8x8xf32> to vector<8x8xf32>
    %165 = vector.shape_cast %162 : vector<8x8xf32> to vector<1x1x8x8xf32>
    tpu.vector_store %arg6[%c1_55, %c0_56, %c0_57, %c0_58], %165 {strides = array<i32>} : memref<2x2x8x8xf32, #tpu.memory_space<vmem>>, vector<1x1x8x8xf32>,
    %166 = vector.extract_strided_slice %157 {offsets = [0, 8], sizes = [8, 8], strides = [1, 1]} : vector<8x16xf32> to vector<8x8xf32>
    %c0_59 = arith.constant 0 : index
    %c1_60 = arith.constant 1 : index
    %c0_61 = arith.constant 0 : index
    %c0_62 = arith.constant 0 : index
    %167 = vector.load %arg6[%c0_59, %c1_60, %c0_61, %c0_62] : memref<2x2x8x8xf32, #tpu.memory_space<vmem>>, vector<1x1x8x8xf32>
    %168 = vector.shape_cast %167 : vector<1x1x8x8xf32> to vector<8x8xf32>
    %169 = vector.shape_cast %166 : vector<8x8xf32> to vector<1x1x8x8xf32>
    tpu.vector_store %arg6[%c0_59, %c1_60, %c0_61, %c0_62], %169 {strides = array<i32>} : memref<2x2x8x8xf32, #tpu.memory_space<vmem>>, vector<1x1x8x8xf32>,
    %170 = vector.extract_strided_slice %153 {offsets = [0, 8], sizes = [8, 8], strides = [1, 1]} : vector<8x16xf32> to vector<8x8xf32>
    %c1_63 = arith.constant 1 : index
    %c1_64 = arith.constant 1 : index
    %c0_65 = arith.constant 0 : index
    %c0_66 = arith.constant 0 : index
    %171 = vector.load %arg6[%c1_63, %c1_64, %c0_65, %c0_66] : memref<2x2x8x8xf32, #tpu.memory_space<vmem>>, vector<1x1x8x8xf32>
    %172 = vector.shape_cast %171 : vector<1x1x8x8xf32> to vector<8x8xf32>
    %173 = vector.shape_cast %170 : vector<8x8xf32> to vector<1x1x8x8xf32>
    tpu.vector_store %arg6[%c1_63, %c1_64, %c0_65, %c0_66], %173 {strides = array<i32>} : memref<2x2x8x8xf32, #tpu.memory_space<vmem>>, vector<1x1x8x8xf32>,
    %c0_67 = arith.constant 0 : index
    %c0_68 = arith.constant 0 : index
    %c0_69 = arith.constant 0 : index
    %c0_70 = arith.constant 0 : index
    %174 = vector.load %arg6[%c0_67, %c0_68, %c0_69, %c0_70] : memref<2x2x8x8xf32, #tpu.memory_space<vmem>>, vector<1x2x8x8xf32>
    %175 = vector.shape_cast %174 : vector<1x2x8x8xf32> to vector<2x8x8xf32>
    %c1_71 = arith.constant 1 : index
    %c0_72 = arith.constant 0 : index
    %c0_73 = arith.constant 0 : index
    %c0_74 = arith.constant 0 : index
    %176 = vector.load %arg6[%c1_71, %c0_72, %c0_73, %c0_74] : memref<2x2x8x8xf32, #tpu.memory_space<vmem>>, vector<1x2x8x8xf32>
    %177 = vector.shape_cast %176 : vector<1x2x8x8xf32> to vector<2x8x8xf32>
    %cst_75 = arith.constant dense<0xFF800000> : vector<2x8xf32>
    %178 = vector.multi_reduction <maximumf>, %175, %cst_75 [2] : vector<2x8x8xf32> to vector<2x8xf32>
    %c0_76 = arith.constant 0 : index
    %c0_77 = arith.constant 0 : index
    %c0_78 = arith.constant 0 : index
    %179 = vector.load %arg7[%c0_76, %c0_77, %c0_78] : memref<2x2x8xf32, #tpu.memory_space<vmem>>, vector<1x2x8xf32>
    %180 = vector.shape_cast %179 : vector<1x2x8xf32> to vector<2x8xf32>
    %181 = vector.shape_cast %178 : vector<2x8xf32> to vector<1x2x8xf32>
    tpu.vector_store %arg7[%c0_76, %c0_77, %c0_78], %181 {strides = array<i32>} : memref<2x2x8xf32, #tpu.memory_space<vmem>>, vector<1x2x8xf32>,
    %cst_79 = arith.constant dense<0xFF800000> : vector<2x8xf32>
    %182 = vector.multi_reduction <maximumf>, %177, %cst_79 [2] : vector<2x8x8xf32> to vector<2x8xf32>
    %183 = vector.shape_cast %182 : vector<2x8xf32> to vector<2x8x1xf32>
    %184 = tpu.iota {dimensions = array<i32: 2>} : vector<2x8x8xi32>
    %185 = vector.broadcast %183 : vector<2x8x1xf32> to vector<2x8x8xf32>
    %186 = arith.cmpf oeq, %177, %185 : vector<2x8x8xf32>
    %c8_i32 = arith.constant 8 : i32
    %187 = vector.broadcast %c8_i32 : i32 to vector<2x8x8xi32>
    %188 = arith.select %186, %184, %187 : vector<2x8x8xi1>, vector<2x8x8xi32>
    %cst_80 = arith.constant dense<2147483647> : vector<2x8xi32>
    %189 = vector.multi_reduction <minsi>, %188, %cst_80 [2] : vector<2x8x8xi32> to vector<2x8xi32>
    %190 = arith.sitofp %189 : vector<2x8xi32> to vector<2x8xf32>
    %c1_81 = arith.constant 1 : index
    %c0_82 = arith.constant 0 : index
    %c0_83 = arith.constant 0 : index
    %191 = vector.load %arg7[%c1_81, %c0_82, %c0_83] : memref<2x2x8xf32, #tpu.memory_space<vmem>>, vector<1x2x8xf32>
    %192 = vector.shape_cast %191 : vector<1x2x8xf32> to vector<2x8xf32>
    %193 = vector.shape_cast %190 : vector<2x8xf32> to vector<1x2x8xf32>
    tpu.vector_store %arg7[%c1_81, %c0_82, %c0_83], %193 {strides = array<i32>} : memref<2x2x8xf32, #tpu.memory_space<vmem>>, vector<1x2x8xf32>,
    return
  }
  func.func @transform_0(%arg0: i32) -> (i32, i32) {
    %c0_i32 = arith.constant 0 : i32
    %c0_i32_0 = arith.constant 0 : i32
    return %c0_i32, %arg0 : i32, i32
  }
  func.func @transform_1(%arg0: i32) -> (i32, i32) {
    %c0_i32 = arith.constant 0 : i32
    %c0_i32_0 = arith.constant 0 : i32
    %c0_i32_1 = arith.constant 0 : i32
    return %c0_i32, %c0_i32_0 : i32, i32
  }
  func.func @transform_2(%arg0: i32) -> (i32, i32) {
    %c0_i32 = arith.constant 0 : i32
    %c0_i32_0 = arith.constant 0 : i32
    %c0_i32_1 = arith.constant 0 : i32
    return %c0_i32, %c0_i32_0 : i32, i32
  }
  func.func @transform_3(%arg0: i32) -> (i32, i32) {
    %c0_i32 = arith.constant 0 : i32
    %c0_i32_0 = arith.constant 0 : i32
    %c0_i32_1 = arith.constant 0 : i32
    return %c0_i32, %c0_i32_0 : i32, i32
  }
  func.func @transform_4(%arg0: i32) -> (i32, i32) {
    %c0_i32 = arith.constant 0 : i32
    %c0_i32_0 = arith.constant 0 : i32
    %c0_i32_1 = arith.constant 0 : i32
    return %c0_i32, %c0_i32_0 : i32, i32
  }
  func.func @transform_5(%arg0: i32) -> (i32, i32, i32, i32) {
    %c0_i32 = arith.constant 0 : i32
    %c0_i32_0 = arith.constant 0 : i32
    %c0_i32_1 = arith.constant 0 : i32
    %c0_i32_2 = arith.constant 0 : i32
    return %c0_i32, %arg0, %c0_i32_0, %c0_i32_1 : i32, i32, i32, i32
  }
  func.func @transform_6(%arg0: i32) -> (i32, i32, i32) {
    %c0_i32 = arith.constant 0 : i32
    %c0_i32_0 = arith.constant 0 : i32
    %c0_i32_1 = arith.constant 0 : i32
    return %c0_i32, %arg0, %c0_i32_0 : i32, i32, i32
  }
}

module attributes {stable_mosaic.version = 11 : i64} {
  func.func @attention_kernel(%arg0: i32, %arg1: memref<2x2x64xf32, #tpu.memory_space<vmem>>, %arg2: memref<2x2x8xf32, #tpu.memory_space<vmem>>, %arg3: memref<64x32xbf16, #tpu.memory_space<vmem>>, %arg4: memref<8x32xf32, #tpu.memory_space<vmem>>, %arg5: memref<8x32xf32, #tpu.memory_space<vmem>>, %arg6: memref<32x64xbf16, #tpu.memory_space<vmem>>, %arg7: memref<2x64xf32, #tpu.memory_space<vmem>>, %arg8: memref<2x32xf32, #tpu.memory_space<vmem>>, %arg9: memref<2x8xf32, #tpu.memory_space<vmem>>) attributes {dimension_semantics = [#tpu.dimension_semantics<parallel>], iteration_bounds = array<i64: 1>, scalar_prefetch = 0 : i64, scratch_operands = 0 : i64, tpu.core_type = #tpu.core_type<tc>, window_params = [{transform_indices = @transform_0, window_bounds = array<i64: 2, 2, 64>}, {transform_indices = @transform_1, window_bounds = array<i64: 2, 2, 8>}, {pipeline_mode = #tpu.pipeline_mode<synchronous>, transform_indices = @transform_2, window_bounds = array<i64: 64, 32>}, {pipeline_mode = #tpu.pipeline_mode<synchronous>, transform_indices = @transform_3, window_bounds = array<i64: 8, 32>}, {pipeline_mode = #tpu.pipeline_mode<synchronous>, transform_indices = @transform_4, window_bounds = array<i64: 8, 32>}, {pipeline_mode = #tpu.pipeline_mode<synchronous>, transform_indices = @transform_5, window_bounds = array<i64: 32, 64>}, {pipeline_mode = #tpu.pipeline_mode<synchronous>, transform_indices = @transform_6, window_bounds = array<i64: 2, 64>}, {transform_indices = @transform_7, window_bounds = array<i64: 2, 32>}, {transform_indices = @transform_8, window_bounds = array<i64: 2, 8>}]} {
    %c0 = arith.constant 0 : index
    %c0_0 = arith.constant 0 : index
    %c0_1 = arith.constant 0 : index
    %0 = vector.load %arg1[%c0, %c0_0, %c0_1] : memref<2x2x64xf32, #tpu.memory_space<vmem>>, vector<1x2x64xf32>
    %1 = vector.shape_cast %0 : vector<1x2x64xf32> to vector<2x64xf32>
    %c1 = arith.constant 1 : index
    %c0_2 = arith.constant 0 : index
    %c0_3 = arith.constant 0 : index
    %2 = vector.load %arg1[%c1, %c0_2, %c0_3] : memref<2x2x64xf32, #tpu.memory_space<vmem>>, vector<1x2x64xf32>
    %3 = vector.shape_cast %2 : vector<1x2x64xf32> to vector<2x64xf32>
    %c0_4 = arith.constant 0 : index
    %c0_5 = arith.constant 0 : index
    %c0_6 = arith.constant 0 : index
    %4 = vector.load %arg2[%c0_4, %c0_5, %c0_6] : memref<2x2x8xf32, #tpu.memory_space<vmem>>, vector<1x2x8xf32>
    %5 = vector.shape_cast %4 : vector<1x2x8xf32> to vector<2x8xf32>
    %c1_7 = arith.constant 1 : index
    %c0_8 = arith.constant 0 : index
    %c0_9 = arith.constant 0 : index
    %6 = vector.load %arg2[%c1_7, %c0_8, %c0_9] : memref<2x2x8xf32, #tpu.memory_space<vmem>>, vector<1x2x8xf32>
    %7 = vector.shape_cast %6 : vector<1x2x8xf32> to vector<2x8xf32>
    %c0_10 = arith.constant 0 : index
    %c0_11 = arith.constant 0 : index
    %8 = vector.load %arg3[%c0_10, %c0_11] : memref<64x32xbf16, #tpu.memory_space<vmem>>, vector<64x32xbf16>
    %9 = arith.truncf %1 : vector<2x64xf32> to vector<2x64xbf16>
    %cst = arith.constant dense<0.000000e+00> : vector<2x32xf32>
    %10 = tpu.matmul %9, %8, %cst {dimension_numbers = #tpu.dot_dimension_numbers<[1], [0], [0], [1], [0, 0, 1, 1], [], []>} : vector<2x64xbf16>, vector<64x32xbf16>, vector<2x32xf32> -> vector<2x32xf32>
    %11 = arith.truncf %3 : vector<2x64xf32> to vector<2x64xbf16>
    %cst_12 = arith.constant dense<0.000000e+00> : vector<2x32xf32>
    %12 = tpu.matmul %11, %8, %cst_12 {dimension_numbers = #tpu.dot_dimension_numbers<[1], [0], [0], [1], [0, 0, 1, 1], [], []>} : vector<2x64xbf16>, vector<64x32xbf16>, vector<2x32xf32> -> vector<2x32xf32>
    %c0_13 = arith.constant 0 : index
    %c0_14 = arith.constant 0 : index
    %13 = vector.load %arg4[%c0_13, %c0_14] : memref<8x32xf32, #tpu.memory_space<vmem>>, vector<8x32xf32>
    %cst_15 = arith.constant dense<0.000000e+00> : vector<2x32xf32>
    %14 = tpu.matmul %5, %13, %cst_15 {dimension_numbers = #tpu.dot_dimension_numbers<[1], [0], [0], [1], [0, 0, 1, 1], [], []>} : vector<2x8xf32>, vector<8x32xf32>, vector<2x32xf32> -> vector<2x32xf32>
    %c0_16 = arith.constant 0 : index
    %c0_17 = arith.constant 0 : index
    %15 = vector.load %arg4[%c0_16, %c0_17] : memref<8x32xf32, #tpu.memory_space<vmem>>, vector<8x32xf32>
    %cst_18 = arith.constant dense<0.000000e+00> : vector<2x32xf32>
    %16 = tpu.matmul %7, %15, %cst_18 {dimension_numbers = #tpu.dot_dimension_numbers<[1], [0], [0], [1], [0, 0, 1, 1], [], []>} : vector<2x8xf32>, vector<8x32xf32>, vector<2x32xf32> -> vector<2x32xf32>
    %c0_19 = arith.constant 0 : index
    %c0_20 = arith.constant 0 : index
    %17 = vector.load %arg5[%c0_19, %c0_20] : memref<8x32xf32, #tpu.memory_space<vmem>>, vector<8x32xf32>
    %cst_21 = arith.constant dense<0.000000e+00> : vector<2x32xf32>
    %18 = tpu.matmul %5, %17, %cst_21 {dimension_numbers = #tpu.dot_dimension_numbers<[1], [0], [0], [1], [0, 0, 1, 1], [], []>} : vector<2x8xf32>, vector<8x32xf32>, vector<2x32xf32> -> vector<2x32xf32>
    %c0_22 = arith.constant 0 : index
    %c0_23 = arith.constant 0 : index
    %19 = vector.load %arg5[%c0_22, %c0_23] : memref<8x32xf32, #tpu.memory_space<vmem>>, vector<8x32xf32>
    %cst_24 = arith.constant dense<0.000000e+00> : vector<2x32xf32>
    %20 = tpu.matmul %7, %19, %cst_24 {dimension_numbers = #tpu.dot_dimension_numbers<[1], [0], [0], [1], [0, 0, 1, 1], [], []>} : vector<2x8xf32>, vector<8x32xf32>, vector<2x32xf32> -> vector<2x32xf32>
    %21 = tpu.iota {dimensions = array<i32: 0>} : vector<32x2xi32>
    %22 = tpu.iota {dimensions = array<i32: 1>} : vector<32x2xi32>
    %c16_i32 = arith.constant 16 : i32
    %23 = vector.broadcast %c16_i32 : i32 to vector<32x2xi32>
    %24 = arith.muli %22, %23 : vector<32x2xi32>
    %25 = arith.cmpi sge, %21, %24 : vector<32x2xi32>
    %c1_i32 = arith.constant 1 : i32
    %26 = vector.broadcast %c1_i32 : i32 to vector<32x2xi32>
    %27 = arith.addi %22, %26 : vector<32x2xi32>
    %c16_i32_25 = arith.constant 16 : i32
    %28 = vector.broadcast %c16_i32_25 : i32 to vector<32x2xi32>
    %29 = arith.muli %27, %28 : vector<32x2xi32>
    %30 = arith.cmpi slt, %21, %29 : vector<32x2xi32>
    %31 = arith.andi %25, %30 : vector<32x2xi1>
    %32 = arith.extui %31 : vector<32x2xi1> to vector<32x2xi32>
    %33 = arith.sitofp %32 : vector<32x2xi32> to vector<32x2xf32>
    %34 = tpu.iota {dimensions = array<i32: 0>} : vector<2x32xi32>
    %35 = tpu.iota {dimensions = array<i32: 1>} : vector<2x32xi32>
    %c16_i32_26 = arith.constant 16 : i32
    %36 = vector.broadcast %c16_i32_26 : i32 to vector<2x32xi32>
    %37 = arith.muli %34, %36 : vector<2x32xi32>
    %38 = arith.cmpi sge, %35, %37 : vector<2x32xi32>
    %c1_i32_27 = arith.constant 1 : i32
    %39 = vector.broadcast %c1_i32_27 : i32 to vector<2x32xi32>
    %40 = arith.addi %34, %39 : vector<2x32xi32>
    %c16_i32_28 = arith.constant 16 : i32
    %41 = vector.broadcast %c16_i32_28 : i32 to vector<2x32xi32>
    %42 = arith.muli %40, %41 : vector<2x32xi32>
    %43 = arith.cmpi slt, %35, %42 : vector<2x32xi32>
    %44 = arith.andi %38, %43 : vector<2x32xi1>
    %45 = arith.extui %44 : vector<2x32xi1> to vector<2x32xi32>
    %46 = arith.sitofp %45 : vector<2x32xi32> to vector<2x32xf32>
    %c0_29 = arith.constant 0 : index
    %c0_30 = arith.constant 0 : index
    %47 = vector.load %arg7[%c0_29, %c0_30] : memref<2x64xf32, #tpu.memory_space<vmem>>, vector<1x64xf32>
    %c1_31 = arith.constant 1 : index
    %c0_32 = arith.constant 0 : index
    %48 = vector.load %arg7[%c1_31, %c0_32] : memref<2x64xf32, #tpu.memory_space<vmem>>, vector<1x64xf32>
    %c0_33 = arith.constant 0 : index
    %c0_34 = arith.constant 0 : index
    %49 = vector.load %arg6[%c0_33, %c0_34] : memref<32x64xbf16, #tpu.memory_space<vmem>>, vector<32x64xbf16>
    %50 = arith.mulf %10, %14 : vector<2x32xf32>
    %cst_35 = arith.constant dense<0.000000e+00> : vector<2x2xf32>
    %51 = tpu.matmul %50, %33, %cst_35 {dimension_numbers = #tpu.dot_dimension_numbers<[1], [0], [0], [1], [0, 0, 1, 1], [], []>} : vector<2x32xf32>, vector<32x2xf32>, vector<2x2xf32> -> vector<2x2xf32>
    %cst_36 = arith.constant 2.500000e-01 : f32
    %52 = vector.broadcast %cst_36 : f32 to vector<2x2xf32>
    %53 = arith.mulf %51, %52 : vector<2x2xf32>
    %54 = arith.mulf %10, %16 : vector<2x32xf32>
    %cst_37 = arith.constant dense<0.000000e+00> : vector<2x2xf32>
    %55 = tpu.matmul %54, %33, %cst_37 {dimension_numbers = #tpu.dot_dimension_numbers<[1], [0], [0], [1], [0, 0, 1, 1], [], []>} : vector<2x32xf32>, vector<32x2xf32>, vector<2x2xf32> -> vector<2x2xf32>
    %cst_38 = arith.constant 2.500000e-01 : f32
    %56 = vector.broadcast %cst_38 : f32 to vector<2x2xf32>
    %57 = arith.mulf %55, %56 : vector<2x2xf32>
    %58 = arith.maximumf %53, %57 : vector<2x2xf32>
    %59 = arith.subf %53, %58 : vector<2x2xf32>
    %60 = math.exp %59 : vector<2x2xf32>
    %61 = arith.subf %57, %58 : vector<2x2xf32>
    %62 = math.exp %61 : vector<2x2xf32>
    %63 = arith.addf %60, %62 : vector<2x2xf32>
    %64 = arith.divf %60, %63 : vector<2x2xf32>
    %65 = arith.divf %62, %63 : vector<2x2xf32>
    %cst_39 = arith.constant dense<0.000000e+00> : vector<2x32xf32>
    %66 = tpu.matmul %64, %46, %cst_39 {dimension_numbers = #tpu.dot_dimension_numbers<[1], [0], [0], [1], [0, 0, 1, 1], [], []>} : vector<2x2xf32>, vector<2x32xf32>, vector<2x32xf32> -> vector<2x32xf32>
    %67 = arith.mulf %66, %18 : vector<2x32xf32>
    %cst_40 = arith.constant dense<0.000000e+00> : vector<2x32xf32>
    %68 = tpu.matmul %65, %46, %cst_40 {dimension_numbers = #tpu.dot_dimension_numbers<[1], [0], [0], [1], [0, 0, 1, 1], [], []>} : vector<2x2xf32>, vector<2x32xf32>, vector<2x32xf32> -> vector<2x32xf32>
    %69 = arith.mulf %68, %20 : vector<2x32xf32>
    %70 = arith.addf %67, %69 : vector<2x32xf32>
    %71 = arith.truncf %70 : vector<2x32xf32> to vector<2x32xbf16>
    %cst_41 = arith.constant dense<0.000000e+00> : vector<2x64xf32>
    %72 = tpu.matmul %71, %49, %cst_41 {dimension_numbers = #tpu.dot_dimension_numbers<[1], [0], [0], [1], [0, 0, 1, 1], [], []>} : vector<2x32xbf16>, vector<32x64xbf16>, vector<2x64xf32> -> vector<2x64xf32>
    %73 = arith.addf %72, %1 : vector<2x64xf32>
    %cst_42 = arith.constant dense<0.000000e+00> : vector<2xf32>
    %74 = vector.multi_reduction <add>, %73, %cst_42 [1] : vector<2x64xf32> to vector<2xf32>
    %75 = vector.shape_cast %74 : vector<2xf32> to vector<2x1xf32>
    %cst_43 = arith.constant 6.400000e+01 : f32
    %76 = vector.broadcast %cst_43 : f32 to vector<2x1xf32>
    %77 = arith.divf %75, %76 : vector<2x1xf32>
    %78 = vector.broadcast %77 : vector<2x1xf32> to vector<2x64xf32>
    %79 = arith.subf %73, %78 : vector<2x64xf32>
    %80 = arith.mulf %79, %79 : vector<2x64xf32>
    %cst_44 = arith.constant dense<0.000000e+00> : vector<2xf32>
    %81 = vector.multi_reduction <add>, %80, %cst_44 [1] : vector<2x64xf32> to vector<2xf32>
    %82 = vector.shape_cast %81 : vector<2xf32> to vector<2x1xf32>
    %cst_45 = arith.constant 6.400000e+01 : f32
    %83 = vector.broadcast %cst_45 : f32 to vector<2x1xf32>
    %84 = arith.divf %82, %83 : vector<2x1xf32>
    %85 = vector.broadcast %77 : vector<2x1xf32> to vector<2x64xf32>
    %86 = arith.subf %73, %85 : vector<2x64xf32>
    %cst_46 = arith.constant 9.99999997E-7 : f32
    %87 = vector.broadcast %cst_46 : f32 to vector<2x1xf32>
    %88 = arith.addf %84, %87 : vector<2x1xf32>
    %89 = math.rsqrt %88 : vector<2x1xf32>
    %90 = vector.broadcast %89 : vector<2x1xf32> to vector<2x64xf32>
    %91 = arith.mulf %86, %90 : vector<2x64xf32>
    %92 = vector.broadcast %47 : vector<1x64xf32> to vector<2x64xf32>
    %93 = arith.mulf %91, %92 : vector<2x64xf32>
    %94 = vector.broadcast %48 : vector<1x64xf32> to vector<2x64xf32>
    %95 = arith.addf %93, %94 : vector<2x64xf32>
    %96 = arith.mulf %12, %14 : vector<2x32xf32>
    %cst_47 = arith.constant dense<0.000000e+00> : vector<2x2xf32>
    %97 = tpu.matmul %96, %33, %cst_47 {dimension_numbers = #tpu.dot_dimension_numbers<[1], [0], [0], [1], [0, 0, 1, 1], [], []>} : vector<2x32xf32>, vector<32x2xf32>, vector<2x2xf32> -> vector<2x2xf32>
    %cst_48 = arith.constant 2.500000e-01 : f32
    %98 = vector.broadcast %cst_48 : f32 to vector<2x2xf32>
    %99 = arith.mulf %97, %98 : vector<2x2xf32>
    %100 = arith.mulf %12, %16 : vector<2x32xf32>
    %cst_49 = arith.constant dense<0.000000e+00> : vector<2x2xf32>
    %101 = tpu.matmul %100, %33, %cst_49 {dimension_numbers = #tpu.dot_dimension_numbers<[1], [0], [0], [1], [0, 0, 1, 1], [], []>} : vector<2x32xf32>, vector<32x2xf32>, vector<2x2xf32> -> vector<2x2xf32>
    %cst_50 = arith.constant 2.500000e-01 : f32
    %102 = vector.broadcast %cst_50 : f32 to vector<2x2xf32>
    %103 = arith.mulf %101, %102 : vector<2x2xf32>
    %104 = arith.maximumf %99, %103 : vector<2x2xf32>
    %105 = arith.subf %99, %104 : vector<2x2xf32>
    %106 = math.exp %105 : vector<2x2xf32>
    %107 = arith.subf %103, %104 : vector<2x2xf32>
    %108 = math.exp %107 : vector<2x2xf32>
    %109 = arith.addf %106, %108 : vector<2x2xf32>
    %110 = arith.divf %106, %109 : vector<2x2xf32>
    %111 = arith.divf %108, %109 : vector<2x2xf32>
    %cst_51 = arith.constant dense<0.000000e+00> : vector<2x32xf32>
    %112 = tpu.matmul %110, %46, %cst_51 {dimension_numbers = #tpu.dot_dimension_numbers<[1], [0], [0], [1], [0, 0, 1, 1], [], []>} : vector<2x2xf32>, vector<2x32xf32>, vector<2x32xf32> -> vector<2x32xf32>
    %113 = arith.mulf %112, %18 : vector<2x32xf32>
    %cst_52 = arith.constant dense<0.000000e+00> : vector<2x32xf32>
    %114 = tpu.matmul %111, %46, %cst_52 {dimension_numbers = #tpu.dot_dimension_numbers<[1], [0], [0], [1], [0, 0, 1, 1], [], []>} : vector<2x2xf32>, vector<2x32xf32>, vector<2x32xf32> -> vector<2x32xf32>
    %115 = arith.mulf %114, %20 : vector<2x32xf32>
    %116 = arith.addf %113, %115 : vector<2x32xf32>
    %117 = arith.truncf %116 : vector<2x32xf32> to vector<2x32xbf16>
    %cst_53 = arith.constant dense<0.000000e+00> : vector<2x64xf32>
    %118 = tpu.matmul %117, %49, %cst_53 {dimension_numbers = #tpu.dot_dimension_numbers<[1], [0], [0], [1], [0, 0, 1, 1], [], []>} : vector<2x32xbf16>, vector<32x64xbf16>, vector<2x64xf32> -> vector<2x64xf32>
    %119 = arith.addf %118, %3 : vector<2x64xf32>
    %cst_54 = arith.constant dense<0.000000e+00> : vector<2xf32>
    %120 = vector.multi_reduction <add>, %119, %cst_54 [1] : vector<2x64xf32> to vector<2xf32>
    %121 = vector.shape_cast %120 : vector<2xf32> to vector<2x1xf32>
    %cst_55 = arith.constant 6.400000e+01 : f32
    %122 = vector.broadcast %cst_55 : f32 to vector<2x1xf32>
    %123 = arith.divf %121, %122 : vector<2x1xf32>
    %124 = vector.broadcast %123 : vector<2x1xf32> to vector<2x64xf32>
    %125 = arith.subf %119, %124 : vector<2x64xf32>
    %126 = arith.mulf %125, %125 : vector<2x64xf32>
    %cst_56 = arith.constant dense<0.000000e+00> : vector<2xf32>
    %127 = vector.multi_reduction <add>, %126, %cst_56 [1] : vector<2x64xf32> to vector<2xf32>
    %128 = vector.shape_cast %127 : vector<2xf32> to vector<2x1xf32>
    %cst_57 = arith.constant 6.400000e+01 : f32
    %129 = vector.broadcast %cst_57 : f32 to vector<2x1xf32>
    %130 = arith.divf %128, %129 : vector<2x1xf32>
    %131 = vector.broadcast %123 : vector<2x1xf32> to vector<2x64xf32>
    %132 = arith.subf %119, %131 : vector<2x64xf32>
    %cst_58 = arith.constant 9.99999997E-7 : f32
    %133 = vector.broadcast %cst_58 : f32 to vector<2x1xf32>
    %134 = arith.addf %130, %133 : vector<2x1xf32>
    %135 = math.rsqrt %134 : vector<2x1xf32>
    %136 = vector.broadcast %135 : vector<2x1xf32> to vector<2x64xf32>
    %137 = arith.mulf %132, %136 : vector<2x64xf32>
    %138 = vector.broadcast %47 : vector<1x64xf32> to vector<2x64xf32>
    %139 = arith.mulf %137, %138 : vector<2x64xf32>
    %140 = vector.broadcast %48 : vector<1x64xf32> to vector<2x64xf32>
    %141 = arith.addf %139, %140 : vector<2x64xf32>
    %142 = arith.addf %95, %141 : vector<2x64xf32>
    %cst_59 = arith.constant 0.000000e+00 : f32
    %143 = vector.broadcast %cst_59 : f32 to vector<2x64xf32>
    %144 = arith.cmpf ogt, %142, %143 : vector<2x64xf32>
    %cst_60 = arith.constant 0.000000e+00 : f32
    %145 = vector.broadcast %cst_60 : f32 to vector<2x64xf32>
    %146 = arith.minimumf %142, %145 : vector<2x64xf32>
    %147 = math.exp %146 : vector<2x64xf32>
    %cst_61 = arith.constant 1.000000e+00 : f32
    %148 = vector.broadcast %cst_61 : f32 to vector<2x64xf32>
    %149 = arith.subf %147, %148 : vector<2x64xf32>
    %cst_62 = arith.constant 1.67326319 : f32
    %150 = vector.broadcast %cst_62 : f32 to vector<2x64xf32>
    %151 = arith.mulf %150, %149 : vector<2x64xf32>
    %152 = arith.select %144, %142, %151 : vector<2x64xi1>, vector<2x64xf32>
    %cst_63 = arith.constant 1.05070102 : f32
    %153 = vector.broadcast %cst_63 : f32 to vector<2x64xf32>
    %154 = arith.mulf %153, %152 : vector<2x64xf32>
    %155 = vector.shape_cast %154 : vector<2x64xf32> to vector<2x32x2xf32>
    %cst_64 = arith.constant dense<0.000000e+00> : vector<2x32xf32>
    %156 = vector.multi_reduction <add>, %155, %cst_64 [2] : vector<2x32x2xf32> to vector<2x32xf32>
    %cst_65 = arith.constant 0.707106769 : f32
    %157 = vector.broadcast %cst_65 : f32 to vector<2x32xf32>
    %158 = arith.mulf %156, %157 : vector<2x32xf32>
    %c0_66 = arith.constant 0 : index
    %c0_67 = arith.constant 0 : index
    %159 = vector.load %arg8[%c0_66, %c0_67] : memref<2x32xf32, #tpu.memory_space<vmem>>, vector<2x32xf32>
    tpu.vector_store %arg8[%c0_66, %c0_67], %158 {strides = array<i32>} : memref<2x32xf32, #tpu.memory_space<vmem>>, vector<2x32xf32>,
    %160 = tpu.concatenate %64, %65, %110, %111 in 1 : vector<2x2xf32>, vector<2x2xf32>, vector<2x2xf32>, vector<2x2xf32> -> vector<2x8xf32>
    %c0_68 = arith.constant 0 : index
    %c0_69 = arith.constant 0 : index
    %161 = vector.load %arg9[%c0_68, %c0_69] : memref<2x8xf32, #tpu.memory_space<vmem>>, vector<2x8xf32>
    tpu.vector_store %arg9[%c0_68, %c0_69], %160 {strides = array<i32>} : memref<2x8xf32, #tpu.memory_space<vmem>>, vector<2x8xf32>,
    return
  }
  func.func @transform_0(%arg0: i32) -> (i32, i32, i32) {
    %c0_i32 = arith.constant 0 : i32
    %c0_i32_0 = arith.constant 0 : i32
    %c0_i32_1 = arith.constant 0 : i32
    return %c0_i32, %arg0, %c0_i32_0 : i32, i32, i32
  }
  func.func @transform_1(%arg0: i32) -> (i32, i32, i32) {
    %c0_i32 = arith.constant 0 : i32
    %c0_i32_0 = arith.constant 0 : i32
    %c0_i32_1 = arith.constant 0 : i32
    return %c0_i32, %arg0, %c0_i32_0 : i32, i32, i32
  }
  func.func @transform_2(%arg0: i32) -> (i32, i32) {
    %c0_i32 = arith.constant 0 : i32
    %c0_i32_0 = arith.constant 0 : i32
    %c0_i32_1 = arith.constant 0 : i32
    return %c0_i32, %c0_i32_0 : i32, i32
  }
  func.func @transform_3(%arg0: i32) -> (i32, i32) {
    %c0_i32 = arith.constant 0 : i32
    %c0_i32_0 = arith.constant 0 : i32
    %c0_i32_1 = arith.constant 0 : i32
    return %c0_i32, %c0_i32_0 : i32, i32
  }
  func.func @transform_4(%arg0: i32) -> (i32, i32) {
    %c0_i32 = arith.constant 0 : i32
    %c0_i32_0 = arith.constant 0 : i32
    %c0_i32_1 = arith.constant 0 : i32
    return %c0_i32, %c0_i32_0 : i32, i32
  }
  func.func @transform_5(%arg0: i32) -> (i32, i32) {
    %c0_i32 = arith.constant 0 : i32
    %c0_i32_0 = arith.constant 0 : i32
    %c0_i32_1 = arith.constant 0 : i32
    return %c0_i32, %c0_i32_0 : i32, i32
  }
  func.func @transform_6(%arg0: i32) -> (i32, i32) {
    %c0_i32 = arith.constant 0 : i32
    %c0_i32_0 = arith.constant 0 : i32
    %c0_i32_1 = arith.constant 0 : i32
    return %c0_i32, %c0_i32_0 : i32, i32
  }
  func.func @transform_7(%arg0: i32) -> (i32, i32) {
    %c0_i32 = arith.constant 0 : i32
    %c0_i32_0 = arith.constant 0 : i32
    return %arg0, %c0_i32 : i32, i32
  }
  func.func @transform_8(%arg0: i32) -> (i32, i32) {
    %c0_i32 = arith.constant 0 : i32
    %c0_i32_0 = arith.constant 0 : i32
    return %arg0, %c0_i32 : i32, i32
  }
}

</mosaic_0001>

<bundles_post_ra>
// kernel: residual_attention_forward.2
= control target key start
LH: loop header
LB: loop body
LE: loop exit
PB: predicated region body
PF: predicated region fallthrough
CT: control target
= control target key end

     0   :  { %vm74_vm0 = vcmask 1041408   ;;  %vm67_vm1 = vcmask 31744   ;;  %v1495_v1 = vmov 0   ;;  %v1496_v6 = vmov 1   ;;  %s1501_s29 = smov 31   ;;  %s1509_s12 = smov 118   ;;  %s1969_s0 = inlined_call_operand.vmem [shape: bf16[4,32], index: 0, kind: input, shape index: {}]   ;;  %s1970_s1 = inlined_call_operand.vmem [shape: bf16[24,4], index: 1, kind: input, shape index: {}]   ;;  %s1971_s4 = inlined_call_operand.vmem [shape: f32[8,6], index: 4, kind: input, shape index: {}]   ;;  %s1972_s2 = inlined_call_operand.vmem [shape: bf16[24,8], index: 2, kind: input, shape index: {}]   ;;  %s1973_s3 = inlined_call_operand.vmem [shape: bf16[8,4], index: 3, kind: input, shape index: {}]   ;;  %s1974_s5 = inlined_call_operand.vmem [shape: f32[2,2,8,8], index: 5, kind: output, shape index: {0}]   ;;  %s1975_s6 = inlined_call_operand.vmem [shape: f32[2,2,8], index: 6, kind: output, shape index: {1}]  }
   0x1   :  { %v23_v0 = vld [vmem:[%s1969_s0] sm:$0x3]  ;;  %1478 = vset.pattern.permute.xlu1 %v1495_v1  ;;  %v1486_v4 = vld [vmem:[%s1970_s1 + $0x8] ss:$0 sps:$4 sm:$0xff]   ;;  %v1497_v7 = vmov 0.0   ;;  %s1498_s0 = smov 127   ;;  %v24_v14 = vlaneseq }
   0x2   :  { %1447 = vmatprep.subr.msk.bf16.mxu0 %vm74_vm0, %v23_v0  ;;  %v76_v2 = vsel %vm74_vm0, %v23_v0, 0  ;;  %v1485_v3 = vld [vmem:[%s1970_s1] sm:$0xff]   ;;  %s1499_s1 = smov 97   ;;  %vm181_vm2 = vcmask 64512   ;;  %v1502_v13 = vmov 2   ;;  %vm133_vm4 = vcmask 7168  }
   0x3   :  { %1430 = vmatpush3.bf16.msra.mxu0 %v76_v2  ;;  %v1571_v5 = vld [vmem:[%s1971_s4] sm:$0xff]  ;;  %1431 = vmatprep.mubr.msk.bf16.mxu0 %vm67_vm1, %v1485_v3  ;;  %s1500_s4 = smov 1   ;;  %v1588_v15 = vand.u32 127, %v24_v14  ;;  %vm146_vm6 = vcmask 252928   ;;  %vm188_vm8 = vcmask 1043456   ;;  %v1503_v45 = vmov 3  }
   0x4   :  { %152 = vperm.xlu1 %1478, %v1571_v5   ;;  %1441 = vmatprep.subr.bf16.mxu0 %v1497_v7  ;;  %v1487_v12 = vld [vmem:[%s1972_s2] sm:$0xff]   ;;  %v1488_v44 = vld [vmem:[%s1972_s2 + $0x8] ss:$0 sps:$4 sm:$0xff]   ;;  %vm1504_vm9 = vmmov 0   ;;  %v1505_v51 = vmov 4   ;;  %v1506_v52 = vmov 5  }
   0x5   :  { %1437 = vmatprep.mubr.msk.bf16.mxu1 %vm181_vm2, %v1487_v12  ;;  %1480 = vset.pattern.permute.xlu0 %v1502_v13  ;;  %v30_v16 = vand.u32 15, %v1588_v15  ;;  %v280_v46 = vld [vmem:[%s1973_s3] sm:$0xf]  ;;  %s1507_s2 = smov 122   ;;  %s1508_s3 = smov 126   ;;  %vm660_vm11 = vcmask 15360  }
   0x6   :  { %1432 = vmatmul.mubr.msk.bf16.vlgmr.msra.gmra.mrb[0].mxu0 %vm67_vm1, %v1486_v4  ;;  %s1510_s13 = smov 124   ;;  %s1511_s14 = smov 114   ;;  %vm1147_vm13 = vcmask 1041409   ;;  %vm1149_vm14 = vcmask 1042434   ;;  %vm1151_vm15 = vcmask 1043459   ;;  %vm1153_vm0 = vcmask 1044484  }
   0x7   :  { %1442 = vmatpush3.bf16.msra.mxu0 %v76_v2  ;;  %v38_v17 = vadd.s32 4294967295, %v30_v16  ;;  %v49_v19 = vadd.s32 1, %v30_v16  ;;  %1443 = vmatprep.mubr.msk.bf16.mxu0 %vm1504_vm9, %v1497_v7  ;;  %s1512_s15 = smov 120   ;;  %s1513_s16 = smov 110   ;;  %vm1335_vm9 = vcmask 58368  }
   0x8   :  { %1479 = vset.pattern.permute.xlu1 %v1496_v6  ;;  %s1514_s17 = smov 116   ;;  %s1515_s18 = smov 106  }
   0x9   :  { %vm39_vm3 = vcmp.ge.s32.totalorder %v38_v17, 0  ;;  %vm51_vm5 = vcmp.lt.s32.totalorder %v49_v19, 16  ;;  %s1516_s19 = smov 112   ;;  %s1517_s20 = smov 102   ;;  %v1522_v19 = vmov 1983009808  }
   0xa   :  { %v1401_v21 = vsel %vm39_vm3, 1.0, %v1497_v7  ;;  %v1402_v25 = vsel %vm51_vm5, 1.0, %v1497_v7  ;;  %s1518_s21 = smov 108   ;;  %s1519_s22 = smov 98   ;;  %vm1157_vm3 = vcmask 1046534  }
   0xb   :  { %s1520_s23 = smov 104   ;;  %s1521_s24 = smov 100  }
   0xe   :  { %1444 = vmatmul.mubr.msk.bf16.vlgmr.msra.gmra.mrb[4].mxu0 %vm67_vm1, %v280_v46  ;;  %vm1155_vm1 = vcmask 1045509  }
  0x83   :  { %v153_v20 = vpop.permute.xlu1 %152 }
  0xd9   :  { %v1433_v8 = vpop.f32.mrb[0].mxu0 }
  0xda   :  { %140 = vrot.lane.b32.xlu1 %v1433_v8, %s1498_s0  ;;  %v112_v9 = vpop.f32.mrb[1].mxu0 }
  0xdb   :  { %127 = vrot.lane.b32.xlu0 %v112_v9, %s1499_s1  ;;  %v1434_v10 = vpop.f32.mrb[2].mxu0 }
  0xdc   :  { %v115_v11 = vpop.f32.mrb[3].mxu0 }
  0xde   :  { %157 = vperm.xlu1 %1479, %v1571_v5  }
  0xdf   :  { %130 = vrot.lane.b32.xlu0 %v112_v9, %s1500_s4 }
  0xe2   :  { %1482 = vset.pattern.permute.xlu1 %v1505_v51 }
  0xe3   :  { %143 = vrot.lane.b32.xlu0 %v1433_v8, %s1501_s29 }
  0xe7   :  { %263 = vperm.xlu0 %1480, %v1571_v5  }
  0xeb   :  { %1481 = vset.pattern.permute.xlu0 %v1503_v45 }
 0x14c   :  { %v141_v26 = vpop.permute.xlu1 %140 }
 0x14d   :  { %v128_v18 = vpop.permute.xlu0 %127 }
 0x151   :  { %v131_v22 = vpop.permute.xlu0 %130 }
 0x152   :  { %v134_v23 = vsel %vm133_vm4, %v128_v18, %v131_v22 }
 0x153   :  { %v135_v24 = vmul.f32 %v1401_v21, %v134_v23 }
 0x155   :  { %v144_v27 = vpop.permute.xlu0 %143  ;;  %v138_v29 = vadd.f32 %v135_v24, %v115_v11  ;;  %v1643_v11 = vpop.f32.mrb[4].mxu0  ;;  %v1648_v24 = vshrl.u32 %v24_v14, 7 }
 0x156   :  { %v147_v28 = vsel %vm146_vm6, %v141_v26, %v144_v27  ;;  %v1445_v12 = vpop.f32.mrb[5].mxu0 }
 0x157   :  { %v148_v30 = vmul.f32 %v1402_v25, %v147_v28  ;;  %v321_v13 = vpop.f32.mrb[6].mxu0 }
 0x158   :  { %v1446_v16 = vpop.f32.mrb[7].mxu0 }
 0x159   :  { %v149_v31 = vadd.f32 %v148_v30, %v138_v29 }
 0x15b   :  { %v155_v32 = vmul.f32 %v153_v20, %v149_v31  ;;  %v391_v20 = vunpack.c.l.s4 %v1522_v19 }
 0x15d   :  { %v158_v33 = vpop.permute.xlu1 %157  ;;  %v392_v23 = vunpack.c.0.s8 %v391_v20 }
 0x15e   :  { %v160_v34 = vadd.f32 %v158_v33, %v155_v32 }
 0x15f   :  { %v1652_v30 = vsub.s32 %v392_v23, %v1648_v24 }
 0x160   :  { %v162_v35 = vmin.f32 %v160_v34, 0.0  ;;  %vm161_vm7 = vcmp.gt.f32.partialorder %v160_v34, 0.0 }
 0x162   :  { %v163_v36 = vmul.f32 1.442695, %v162_v35 }
 0x164   :  { %1489 = vpow2.f32 %v163_v36 }
 0x166   :  { %v264_v53 = vpop.permute.xlu0 %263 }
 0x16e   :  { %v1490_v37 = vpop.eup %1489 }
 0x16f   :  { %v1407_v38 = vadd.f32 -1.0, %v1490_v37 }
 0x171   :  { %v166_v39 = vmul.f32 1.6732632, %v1407_v38 }
 0x173   :  { %v167_v40 = vsel %vm161_vm7, %v160_v34, %v166_v39 }
 0x174   :  { %v168_v41 = vmul.f32 1.050701, %v167_v40 }
 0x176   :  { %v169_v42 = vpack.c.bf16 %v168_v41, %v168_v41 }
 0x178   :  { %1448 = vmatprep.subr.msk.bf16.mxu1 %vm188_vm8, %v169_v42  ;;  %v190_v43 = vsel %vm188_vm8, %v169_v42, 0 }
 0x179   :  { %1436 = vmatpush3.bf16.msra.mxu1 %v190_v43 }
 0x17c   :  { %1438 = vmatmul.mubr.msk.bf16.vlgmr.msra.gmra.mrb[0].mxu1 %vm181_vm2, %v1488_v44 }
 0x24f   :  { %v1439_v47 = vpop.f32.mrb[0].mxu1 }
 0x250   :  { %253 = vrot.lane.b32.xlu1 %v1439_v47, %s1498_s0  ;;  %v226_v48 = vpop.f32.mrb[1].mxu1 }
 0x251   :  { %241 = vrot.lane.b32.xlu0 %v226_v48, %s1499_s1  ;;  %v1440_v49 = vpop.f32.mrb[2].mxu1 }
 0x252   :  { %v229_v50 = vpop.f32.mrb[3].mxu1 }
 0x254   :  { %244 = vrot.lane.b32.xlu1 %v226_v48, %s1500_s4 }
 0x255   :  { %268 = vperm.xlu0 %1481, %v1571_v5  }
 0x258   :  { %256 = vrot.lane.b32.xlu1 %v1439_v47, %s1501_s29 }
 0x259   :  { %1484 = vset.pattern.permute.xlu0 %v1506_v52 }
 0x2c2   :  { %v254_v54 = vpop.permute.xlu1 %253 }
 0x2c3   :  { %v242_v55 = vpop.permute.xlu0 %241 }
 0x2c6   :  { %v245_v56 = vpop.permute.xlu1 %244 }
 0x2c7   :  { %v247_v57 = vsel %vm133_vm4, %v242_v55, %v245_v56  ;;  %vm1159_vm4 = vcmask 1047559  }
 0x2c8   :  { %v248_v58 = vmul.f32 %v1401_v21, %v247_v57 }
 0x2ca   :  { %v257_v59 = vpop.permute.xlu1 %256  ;;  %v251_v62 = vadd.f32 %v248_v58, %v229_v50 }
 0x2cb   :  { %v259_v60 = vsel %vm146_vm6, %v254_v54, %v257_v59 }
 0x2cc   :  { %v260_v61 = vmul.f32 %v1402_v25, %v259_v60  ;;  %v1523_v25 = vmov 1934713408  }
 0x2cd   :  { %v455_v26 = vunpack.c.l.s4 %v1523_v25 }
 0x2ce   :  { %v261_v63 = vadd.f32 %v260_v61, %v251_v62 }
 0x2cf   :  { %v456_v31 = vunpack.c.0.s8 %v455_v26 }
 0x2d0   :  { %v266_v0 = vmul.f32 %v264_v53, %v261_v63 }
 0x2d1   :  { %v1659_v37 = vsub.s32 %v456_v31, %v1648_v24 }
 0x2d4   :  { %v269_v1 = vpop.permute.xlu0 %268 }
 0x2d5   :  { %v271_v2 = vadd.f32 %v269_v1, %v266_v0 }
 0x2d7   :  { %v273_v3 = vmin.f32 %v271_v2, 0.0  ;;  %vm272_vm10 = vcmp.gt.f32.partialorder %v271_v2, 0.0 }
 0x2d9   :  { %v274_v4 = vmul.f32 1.442695, %v273_v3 }
 0x2db   :  { %1491 = vpow2.f32 %v274_v4 }
 0x2e5   :  { %v1492_v6 = vpop.eup %1491 }
 0x2e6   :  { %v1412_v7 = vadd.f32 -1.0, %v1492_v6 }
 0x2e8   :  { %v277_v8 = vmul.f32 1.6732632, %v1412_v7 }
 0x2ea   :  { %v278_v9 = vsel %vm272_vm10, %v271_v2, %v277_v8 }
 0x2eb   :  { %v1611_v10 = vmul.f32 1.050701, %v278_v9 }
 0x2ed   :  { %349 = vrot.lane.b32.xlu0 %v1611_v10, %s1507_s2  ;;  %343 = vrot.lane.b32.xlu1 %v1611_v10, %s1508_s3 }
 0x2f1   :  { %355 = vrot.lane.b32.xlu0 %v1611_v10, %s1509_s12  ;;  %346 = vrot.lane.b32.xlu1 %v1611_v10, %s1510_s13 }
 0x2f5   :  { %361 = vrot.lane.b32.xlu0 %v1611_v10, %s1511_s14  ;;  %352 = vrot.lane.b32.xlu1 %v1611_v10, %s1512_s15 }
 0x2f9   :  { %367 = vrot.lane.b32.xlu0 %v1611_v10, %s1513_s16  ;;  %358 = vrot.lane.b32.xlu1 %v1611_v10, %s1514_s17 }
 0x2fd   :  { %373 = vrot.lane.b32.xlu0 %v1611_v10, %s1515_s18  ;;  %364 = vrot.lane.b32.xlu1 %v1611_v10, %s1516_s19 }
 0x301   :  { %379 = vrot.lane.b32.xlu0 %v1611_v10, %s1517_s20  ;;  %370 = vrot.lane.b32.xlu1 %v1611_v10, %s1518_s21 }
 0x305   :  { %385 = vrot.lane.b32.xlu0 %v1611_v10, %s1519_s22  ;;  %376 = vrot.lane.b32.xlu1 %v1611_v10, %s1520_s23 }
 0x309   :  { %382 = vrot.lane.b32.xlu1 %v1611_v10, %s1521_s24 }
 0x30d   :  { %325 = vperm.xlu1 %1482, %v1571_v5  }
 0x311   :  { %1483 = vset.pattern.permute.xlu1 %v1506_v52 }
 0x312   :  { %330 = vperm.xlu1 %1483, %v1571_v5  }
 0x35f   :  { %v350_v17 = vpop.permute.xlu0 %349  ;;  %v344_v18 = vpop.permute.xlu1 %343 }
 0x360   :  { %v404_v5 = vcombine.low %v344_v18, %v350_v17  ;;  %v405_v58 = vcombine.high %v344_v18, %v350_v17 }
 0x362   :  { %v412_v14 = vrot.slane %v404_v5, %v1652_v30  ;;  %v1690_v4 = vrot.slane %v405_v58, %v1652_v30 }
 0x363   :  { %v356_v21 = vpop.permute.xlu0 %355  ;;  %v347_v22 = vpop.permute.xlu1 %346 }
 0x364   :  { %v388_v27 = vcombine.low %v1611_v10, %v347_v22  ;;  %v389_v53 = vcombine.high %v1611_v10, %v347_v22 }
 0x366   :  { %v396_v32 = vrot.slane %v388_v27, %v1652_v30  ;;  %v1683_v63 = vrot.slane %v389_v53, %v1652_v30 }
 0x367   :  { %v362_v28 = vpop.permute.xlu0 %361  ;;  %v353_v29 = vpop.permute.xlu1 %352 }
 0x368   :  { %v436_v33 = vcombine.low %v356_v21, %v362_v28  ;;  %v452_v38 = vcombine.low %v396_v32, %v412_v14  ;;  %v437_v54 = vcombine.high %v356_v21, %v362_v28  ;;  %v453_v12 = vcombine.high %v396_v32, %v412_v14 }
 0x369   :  { %v468_v13 = vcombine.low %v1683_v63, %v1690_v4 }
 0x36a   :  { %v444_v39 = vrot.slane %v436_v33, %v1652_v30  ;;  %v460_v44 = vrot.slane %v452_v38, %v1659_v37  ;;  %v1686_v0 = vrot.slane %v437_v54, %v1652_v30  ;;  %v467_v22 = vrot.slane %v453_v12, %v1659_v37 }
 0x36b   :  { %v1655_v34 = vpop.permute.xlu0 %367  ;;  %v359_v35 = vpop.permute.xlu1 %358  ;;  %v476_v23 = vrot.slane %v468_v13, %v1659_v37 }
 0x36c   :  { %v420_v36 = vcombine.low %v353_v29, %v359_v35  ;;  %v421_v49 = vcombine.high %v353_v29, %v359_v35 }
 0x36e   :  { %v428_v40 = vrot.slane %v420_v36, %v1652_v30  ;;  %v1677_v59 = vrot.slane %v421_v49, %v1652_v30 }
 0x36f   :  { %v1663_v41 = vpop.permute.xlu0 %373  ;;  %v1665_v42 = vpop.permute.xlu1 %364 }
 0x370   :  { %v484_v43 = vcombine.low %v428_v40, %v444_v39  ;;  %v540_v57 = vcombine.low %v1655_v34, %v1663_v41  ;;  %v485_v6 = vcombine.high %v428_v40, %v444_v39  ;;  %v500_v7 = vcombine.low %v1677_v59, %v1686_v0 }
 0x371   :  { %v541_v38 = vcombine.high %v1655_v34, %v1663_v41 }
 0x372   :  { %v492_v45 = vrot.slane %v484_v43, %v1659_v37  ;;  %v548_v2 = vrot.slane %v540_v57, %v1652_v30  ;;  %v499_v17 = vrot.slane %v485_v6, %v1659_v37  ;;  %v508_v18 = vrot.slane %v500_v7, %v1659_v37 }
 0x373   :  { %v1669_v46 = vpop.permute.xlu0 %379  ;;  %v371_v47 = vpop.permute.xlu1 %370 }
 0x374   :  { %v516_v48 = vcombine.low %v460_v44, %v492_v45  ;;  %v524_v50 = vcombine.low %v1665_v42, %v371_v47  ;;  %v517_v52 = vcombine.high %v460_v44, %v492_v45  ;;  %v518_v28 = vcombine.low %v467_v22, %v499_v17 }
 0x375   :  { %v520_v29 = vcombine.low %v476_v23, %v508_v18  ;;  %v525_v35 = vcombine.high %v1665_v42, %v371_v47  ;;  %v519_v41 = vcombine.high %v467_v22, %v499_v17 }
 0x376   :  { %v661_v51 = vsel %vm660_vm11, %v516_v48, 0.0  ;;  %v532_v60 = vrot.slane %v524_v50, %v1652_v30  ;;  %v667_v62 = vsel %vm660_vm11, %v517_v52, 0.0  ;;  %v673_v40 = vsel %vm660_vm11, %v518_v28, 0.0 }
 0x377   :  { %v386_v55 = vpop.permute.xlu0 %385  ;;  %662 = vadd.xlane.f32.xlu0 %v661_v51  ;;  %v377_v56 = vpop.permute.xlu1 %376  ;;  %v685_v43 = vsel %vm660_vm11, %v520_v29, 0.0  ;;  %v539_v45 = vrot.slane %v525_v35, %v1652_v30  ;;  %v679_v53 = vsel %vm660_vm11, %v519_v41, 0.0 }
 0x378   :  { %v572_v61 = vcombine.low %v1669_v46, %v386_v55  ;;  %v588_v8 = vcombine.low %v532_v60, %v548_v2  ;;  %v589_v25 = vcombine.high %v532_v60, %v548_v2  ;;  %v573_v14 = vcombine.high %v1669_v46, %v386_v55 }
 0x379   :  { %v555_v46 = vrot.slane %v541_v38, %v1652_v30  ;;  %v469_v2 = vcombine.high %v1683_v63, %v1690_v4 }
 0x37a   :  { %v580_v9 = vrot.slane %v572_v61, %v1652_v30  ;;  %v596_v20 = vrot.slane %v588_v8, %v1659_v37  ;;  %v603_v36 = vrot.slane %v589_v25, %v1659_v37  ;;  %v587_v42 = vrot.slane %v573_v14, %v1652_v30 }
 0x37b   :  { %668 = vadd.xlane.f32.xlu0 %v667_v62  ;;  %v383_v1 = vpop.permute.xlu1 %382  ;;  %v604_v50 = vcombine.low %v539_v45, %v555_v46  ;;  %v501_v61 = vcombine.high %v1677_v59, %v1686_v0 }
 0x37c   :  { %v556_v3 = vcombine.low %v377_v56, %v383_v1  ;;  %v557_v5 = vcombine.high %v377_v56, %v383_v1  ;;  %v521_v1 = vcombine.high %v476_v23, %v508_v18 }
 0x37d   :  { %v612_v57 = vrot.slane %v604_v50, %v1659_v37  ;;  %v515_v8 = vrot.slane %v501_v61, %v1659_v37 }
 0x37e   :  { %v564_v10 = vrot.slane %v556_v3, %v1652_v30  ;;  %v571_v39 = vrot.slane %v557_v5, %v1652_v30  ;;  %v691_v6 = vsel %vm660_vm11, %v521_v1, 0.0 }
 0x380   :  { %v620_v16 = vcombine.low %v564_v10, %v580_v9  ;;  %v621_v19 = vcombine.high %v564_v10, %v580_v9  ;;  %v636_v48 = vcombine.low %v571_v39, %v587_v42  ;;  %v637_v3 = vcombine.high %v571_v39, %v587_v42 }
 0x381   :  { %v605_v9 = vcombine.high %v539_v45, %v555_v46  ;;  %v483_v10 = vrot.slane %v469_v2, %v1659_v37 }
 0x382   :  { %v628_v21 = vrot.slane %v620_v16, %v1659_v37  ;;  %v635_v33 = vrot.slane %v621_v19, %v1659_v37  ;;  %v644_v55 = vrot.slane %v636_v48, %v1659_v37  ;;  %v651_v13 = vrot.slane %v637_v3, %v1659_v37 }
 0x383   :  { %v522_v0 = vcombine.low %v483_v10, %v515_v8  ;;  %v619_v63 = vrot.slane %v605_v9, %v1659_v37  ;;  %v523_v22 = vcombine.high %v483_v10, %v515_v8 }
 0x384   :  { %v653_v26 = vcombine.high %v596_v20, %v628_v21  ;;  %v652_v27 = vcombine.low %v596_v20, %v628_v21  ;;  %v654_v44 = vcombine.low %v603_v36, %v635_v33  ;;  %v655_v54 = vcombine.high %v603_v36, %v635_v33 }
 0x385   :  { %v657_v7 = vcombine.high %v612_v57, %v644_v55  ;;  %v697_v17 = vsel %vm660_vm11, %v522_v0, 0.0  ;;  %v658_v18 = vcombine.low %v619_v63, %v651_v13  ;;  %v703_v23 = vsel %vm660_vm11, %v523_v22, 0.0 }
 0x386   :  { %v670_v31 = vsel %vm660_vm11, %v653_v26, 0.0  ;;  %v664_v32 = vsel %vm660_vm11, %v652_v27, 0.0  ;;  %v676_v34 = vsel %vm660_vm11, %v654_v44, 0.0  ;;  %v682_v60 = vsel %vm660_vm11, %v655_v54, 0.0 }
 0x387   :  { %671 = vadd.xlane.f32.xlu0 %v670_v31  ;;  %665 = vadd.xlane.f32.xlu1 %v664_v32  ;;  %v694_v59 = vsel %vm660_vm11, %v657_v7, 0.0  ;;  %v700_v21 = vsel %vm660_vm11, %v658_v18, 0.0  ;;  %v659_v25 = vcombine.high %v619_v63, %v651_v13  ;;  %v1773_v44 = vsub.s32 %v1588_v15, %v1648_v24 }
 0x389   :  { %v706_v26 = vsel %vm660_vm11, %v659_v25, 0.0 }
 0x38b   :  { %674 = vadd.xlane.f32.xlu0 %v673_v40  ;;  %686 = vadd.xlane.f32.xlu1 %v685_v43 }
 0x38c   :  { %v326_v47 = vpop.permute.xlu1 %325 }
 0x38d   :  { %v328_v49 = vmul.f32 %v326_v47, %v1643_v11  ;;  %v656_v11 = vcombine.low %v612_v57, %v644_v55 }
 0x38f   :  { %677 = vadd.xlane.f32.xlu0 %v676_v34  ;;  %v688_v62 = vsel %vm660_vm11, %v656_v11, 0.0 }
 0x391   :  { %v331_v51 = vpop.permute.xlu1 %330 }
 0x392   :  { %v333_v52 = vadd.f32 %v331_v51, %v328_v49 }
 0x393   :  { %680 = vadd.xlane.f32.xlu0 %v679_v53 }
 0x394   :  { %v335_v56 = vmin.f32 %v333_v52, 0.0  ;;  %vm334_vm12 = vcmp.gt.f32.partialorder %v333_v52, 0.0 }
 0x396   :  { %v336_v58 = vmul.f32 1.442695, %v335_v56 }
 0x397   :  { %683 = vadd.xlane.f32.xlu0 %v682_v60 }
 0x398   :  { %1493 = vpow2.f32 %v336_v58 }
 0x39b   :  { %689 = vadd.xlane.f32.xlu0 %v688_v62 }
 0x39f   :  { %692 = vadd.xlane.f32.xlu0 %v691_v6 }
 0x3a2   :  { %v1494_v12 = vpop.eup %1493 }
 0x3a3   :  { %v1414_v16 = vadd.f32 -1.0, %v1494_v12  ;;  %695 = vadd.xlane.f32.xlu0 %v694_v59 }
 0x3a5   :  { %v339_v4 = vmul.f32 1.6732632, %v1414_v16 }
 0x3a7   :  { %v340_v19 = vsel %vm334_vm12, %v333_v52, %v339_v4  ;;  %698 = vadd.xlane.f32.xlu0 %v697_v17 }
 0x3a8   :  { %v1736_v20 = vmul.f32 1.050701, %v340_v19 }
 0x3aa   :  { %729 = vrot.lane.b32.xlu1 %v1736_v20, %s1510_s13 }
 0x3ab   :  { %701 = vadd.xlane.f32.xlu0 %v700_v21 }
 0x3ae   :  { %735 = vrot.lane.b32.xlu1 %v1736_v20, %s1512_s15 }
 0x3af   :  { %704 = vadd.xlane.f32.xlu0 %v703_v23 }
 0x3b2   :  { %741 = vrot.lane.b32.xlu1 %v1736_v20, %s1514_s17 }
 0x3b3   :  { %707 = vadd.xlane.f32.xlu0 %v706_v26 }
 0x3b6   :  { %747 = vrot.lane.b32.xlu1 %v1736_v20, %s1516_s19 }
 0x3ba   :  { %753 = vrot.lane.b32.xlu1 %v1736_v20, %s1518_s21 }
 0x3be   :  { %759 = vrot.lane.b32.xlu1 %v1736_v20, %s1520_s23 }
 0x3c2   :  { %765 = vrot.lane.b32.xlu1 %v1736_v20, %s1521_s24 }
 0x3c9   :  { %726 = vrot.lane.b32.xlu0 %v1736_v20, %s1508_s3 }
 0x3cd   :  { %732 = vrot.lane.b32.xlu0 %v1736_v20, %s1507_s2 }
 0x3d1   :  { %738 = vrot.lane.b32.xlu0 %v1736_v20, %s1509_s12 }
 0x3d5   :  { %744 = vrot.lane.b32.xlu0 %v1736_v20, %s1511_s14 }
 0x3d9   :  { %750 = vrot.lane.b32.xlu0 %v1736_v20, %s1513_s16 }
 0x3dd   :  { %756 = vrot.lane.b32.xlu0 %v1736_v20, %s1515_s18 }
 0x3e1   :  { %762 = vrot.lane.b32.xlu0 %v1736_v20, %s1517_s20 }
 0x3e5   :  { %768 = vrot.lane.b32.xlu0 %v1736_v20, %s1519_s22 }
 0x404   :  { %v663_v27 = vpop.xlane.xlu0 %662 }
 0x405   :  { %v709_v45 = vmul.f32 0.70710677, %v663_v27 }
 0x407   :  { %v1174_v34 = vrot.slane %v709_v45, %v1773_v44 }
 0x408   :  { %v669_v28 = vpop.xlane.xlu0 %668 }
 0x409   :  { %v711_v39 = vmul.f32 0.70710677, %v669_v28 }
 0x40b   :  { %v1178_v46 = vrot.slane %v711_v39, %v1773_v44 }
 0x40d   :  { %v1203_v56 = vsel %vm1147_vm13, %v1178_v46, %v1174_v34 }
 0x414   :  { %v672_v29 = vpop.xlane.xlu0 %671  ;;  %v666_v14 = vpop.xlane.xlu1 %665 }
 0x415   :  { %v712_v48 = vmul.f32 0.70710677, %v672_v29  ;;  %v710_v41 = vmul.f32 0.70710677, %v666_v14 }
 0x417   :  { %v1278_v58 = vrot.slane %v712_v48, %v1773_v44  ;;  %v1274_v61 = vrot.slane %v710_v41, %v1773_v44 }
 0x418   :  { %v675_v5 = vpop.xlane.xlu0 %674  ;;  %v687_v43 = vpop.xlane.xlu1 %686 }
 0x419   :  { %v713_v40 = vmul.f32 0.70710677, %v675_v5  ;;  %v717_v52 = vmul.f32 0.70710677, %v687_v43  ;;  %v1303_v16 = vsel %vm1147_vm13, %v1278_v58, %v1274_v61 }
 0x41b   :  { %v1182_v49 = vrot.slane %v713_v40, %v1773_v44  ;;  %v1190_v3 = vrot.slane %v717_v52, %v1773_v44 }
 0x41c   :  { %v678_v31 = vpop.xlane.xlu0 %677  ;;  %v1779_v53 = vpop.permute.xlu1 %729 }
 0x41d   :  { %v714_v24 = vmul.f32 0.70710677, %v678_v31  ;;  %v1204_v60 = vsel %vm1149_vm14, %v1182_v49, %v1203_v56  ;;  %v771_v43 = vcombine.low %v1736_v20, %v1779_v53 }
 0x41f   :  { %v1282_v6 = vrot.slane %v714_v24, %v1773_v44  ;;  %v779_v34 = vrot.slane %v771_v43, %v1652_v30 }
 0x420   :  { %v681_v32 = vpop.xlane.xlu0 %680  ;;  %v1790_v10 = vpop.permute.xlu1 %735 }
 0x421   :  { %v715_v42 = vmul.f32 0.70710677, %v681_v32  ;;  %v1304_v18 = vsel %vm1149_vm14, %v1282_v6, %v1303_v16 }
 0x423   :  { %v1186_v50 = vrot.slane %v715_v42, %v1773_v44 }
 0x424   :  { %v684_v33 = vpop.xlane.xlu0 %683  ;;  %v742_v28 = vpop.permute.xlu1 %741 }
 0x425   :  { %v716_v57 = vmul.f32 0.70710677, %v684_v33  ;;  %v1205_v62 = vsel %vm1151_vm15, %v1186_v50, %v1204_v60  ;;  %v803_v42 = vcombine.low %v1790_v10, %v742_v28  ;;  %v804_v56 = vcombine.high %v1790_v10, %v742_v28 }
 0x426   :  { %v1206_v13 = vsel %vm1153_vm0, %v1190_v3, %v1205_v62 }
 0x427   :  { %v1286_v12 = vrot.slane %v716_v57, %v1773_v44  ;;  %v811_v50 = vrot.slane %v803_v42, %v1652_v30 }
 0x428   :  { %v690_v35 = vpop.xlane.xlu0 %689  ;;  %v1817_v14 = vpop.permute.xlu1 %747 }
 0x429   :  { %v718_v11 = vmul.f32 0.70710677, %v690_v35  ;;  %v1305_v23 = vsel %vm1151_vm15, %v1286_v12, %v1304_v18 }
 0x42b   :  { %v1290_v0 = vrot.slane %v718_v11, %v1773_v44 }
 0x42c   :  { %v693_v36 = vpop.xlane.xlu0 %692  ;;  %v754_v46 = vpop.permute.xlu1 %753 }
 0x42d   :  { %v719_v51 = vmul.f32 0.70710677, %v693_v36  ;;  %v1306_v27 = vsel %vm1153_vm0, %v1290_v0, %v1305_v23  ;;  %v907_v3 = vcombine.low %v1817_v14, %v754_v46  ;;  %v908_v28 = vcombine.high %v1817_v14, %v754_v46 }
 0x42f   :  { %v1194_v1 = vrot.slane %v719_v51, %v1773_v44  ;;  %v922_v14 = vrot.slane %v908_v28, %v1652_v30 }
 0x430   :  { %v696_v38 = vpop.xlane.xlu0 %695 }
 0x431   :  { %v720_v2 = vmul.f32 0.70710677, %v696_v38  ;;  %v1207_v63 = vsel %vm1155_vm1, %v1194_v1, %v1206_v13 }
 0x433   :  { %v1294_v4 = vrot.slane %v720_v2, %v1773_v44 }
 0x434   :  { %v699_v47 = vpop.xlane.xlu0 %698 }
 0x435   :  { %v721_v54 = vmul.f32 0.70710677, %v699_v47  ;;  %v1307_v29 = vsel %vm1155_vm1, %v1294_v4, %v1306_v27  ;;  %v915_v4 = vrot.slane %v907_v3, %v1652_v30 }
 0x437   :  { %v1198_v7 = vrot.slane %v721_v54, %v1773_v44  ;;  %v760_v54 = vpop.permute.xlu1 %759 }
 0x438   :  { %v702_v55 = vpop.xlane.xlu0 %701 }
 0x439   :  { %v722_v8 = vmul.f32 0.70710677, %v702_v55  ;;  %v1208_v19 = vsel %vm1157_vm3, %v1198_v7, %v1207_v63  ;;  %v772_v7 = vcombine.high %v1736_v20, %v1779_v53 }
 0x43b   :  { %v1298_v21 = vrot.slane %v722_v8, %v1773_v44  ;;  %v818_v8 = vrot.slane %v804_v56, %v1652_v30  ;;  %v786_v53 = vrot.slane %v772_v7, %v1652_v30 }
 0x43c   :  { %v705_v9 = vpop.xlane.xlu0 %704 }
 0x43d   :  { %v723_v59 = vmul.f32 0.70710677, %v705_v9  ;;  %v1308_v31 = vsel %vm1157_vm3, %v1298_v21, %v1307_v29  ;;  %v766_v9 = vpop.permute.xlu1 %765 }
 0x43f   :  { %v1202_v17 = vrot.slane %v723_v59, %v1773_v44 }
 0x440   :  { %v708_v22 = vpop.xlane.xlu0 %707 }
 0x441   :  { %v1209_v25 = vsel %vm1159_vm4, %v1202_v17, %v1208_v19  ;;  %v724_v26 = vmul.f32 0.70710677, %v708_v22  ;;  %v939_v17 = vcombine.low %v760_v54, %v766_v9 }
 0x442   :  { %1415 = vst.msk [vmem:[%s1974_s5 + $0x10] sm:$0xff] %vm181_vm2, %v1209_v25 }
 0x443   :  { %v1302_v5 = vrot.slane %v724_v26, %v1773_v44  ;;  %v947_v27 = vrot.slane %v939_v17, %v1652_v30 }
 0x444   :  { %v727_v32 = vpop.permute.xlu0 %726 }
 0x445   :  { %v1309_v33 = vsel %vm1159_vm4, %v1302_v5, %v1308_v31 }
 0x446   :  { %1417 = vst.msk [vmem:[%s1974_s5 + $0x18] sm:$0xff] %vm181_vm2, %v1309_v33 }
 0x448   :  { %v733_v35 = vpop.permute.xlu0 %732 }
 0x449   :  { %v1822_v36 = vld [vmem:[%s1974_s5 + $0x10] sm:$0xff]  ;;  %v787_v39 = vcombine.low %v727_v32, %v733_v35  ;;  %v788_v61 = vcombine.high %v727_v32, %v733_v35 }
 0x44a   :  { %v1337_v38 = vsel %vm181_vm2, %v1822_v36, -inf }
 0x44b   :  { %1338 = vmax.xlane.f32.xlu1 %v1337_v38  ;;  %v795_v48 = vrot.slane %v787_v39, %v1652_v30  ;;  %v802_v13 = vrot.slane %v788_v61, %v1652_v30  ;;  %v940_v38 = vcombine.high %v760_v54, %v766_v9 }
 0x44c   :  { %v739_v40 = vpop.permute.xlu0 %738 }
 0x44d   :  { %v1831_v45 = vld [vmem:[%s1974_s5 + $0x18] sm:$0xff]  ;;  %v835_v51 = vcombine.low %v779_v34, %v795_v48  ;;  %v836_v1 = vcombine.high %v779_v34, %v795_v48  ;;  %v851_v22 = vcombine.low %v786_v53, %v802_v13 }
 0x44e   :  { %v1340_v47 = vsel %vm181_vm2, %v1831_v45, -inf }
 0x44f   :  { %1341 = vmax.xlane.f32.xlu0 %v1340_v47  ;;  %v843_v60 = vrot.slane %v835_v51, %v1659_v37  ;;  %v850_v20 = vrot.slane %v836_v1, %v1659_v37  ;;  %v859_v39 = vrot.slane %v851_v22, %v1659_v37  ;;  %v954_v51 = vrot.slane %v940_v38, %v1652_v30 }
 0x450   :  { %v745_v49 = vpop.permute.xlu0 %744 }
 0x451   :  { %v819_v41 = vcombine.low %v739_v40, %v745_v49  ;;  %v820_v57 = vcombine.high %v739_v40, %v745_v49 }
 0x453   :  { %v827_v52 = vrot.slane %v819_v41, %v1652_v30  ;;  %v834_v10 = vrot.slane %v820_v57, %v1652_v30  ;;  %v852_v41 = vcombine.high %v786_v53, %v802_v13 }
 0x454   :  { %v751_v24 = vpop.permute.xlu0 %750 }
 0x455   :  { %v867_v55 = vcombine.low %v811_v50, %v827_v52  ;;  %v868_v58 = vcombine.high %v811_v50, %v827_v52  ;;  %v883_v18 = vcombine.low %v818_v8, %v834_v10  ;;  %v884_v46 = vcombine.high %v818_v8, %v834_v10 }
 0x456   :  { %v866_v61 = vrot.slane %v852_v41, %v1659_v37 }
 0x457   :  { %v875_v11 = vrot.slane %v867_v55, %v1659_v37  ;;  %v882_v0 = vrot.slane %v868_v58, %v1659_v37  ;;  %v891_v32 = vrot.slane %v883_v18, %v1659_v37 }
 0x458   :  { %v757_v62 = vpop.permute.xlu0 %756 }
 0x459   :  { %v923_v2 = vcombine.low %v751_v24, %v757_v62  ;;  %v899_v6 = vcombine.low %v843_v60, %v875_v11  ;;  %v900_v59 = vcombine.high %v843_v60, %v875_v11  ;;  %v901_v21 = vcombine.low %v850_v20, %v882_v0 }
 0x45a   :  { %v902_v31 = vcombine.high %v850_v20, %v882_v0  ;;  %v924_v33 = vcombine.high %v751_v24, %v757_v62  ;;  %v903_v49 = vcombine.low %v859_v39, %v891_v32  ;;  %v904_v60 = vcombine.high %v859_v39, %v891_v32 }
 0x45b   :  { %v1043_v12 = vsel %vm660_vm11, %v899_v6, 0.0  ;;  %v931_v63 = vrot.slane %v923_v2, %v1652_v30  ;;  %v1049_v19 = vsel %vm660_vm11, %v900_v59, 0.0  ;;  %v1055_v5 = vsel %vm660_vm11, %v901_v21, 0.0 }
 0x45c   :  { %v763_v16 = vpop.permute.xlu0 %762  ;;  %1044 = vadd.xlane.f32.xlu0 %v1043_v12  ;;  %v1061_v48 = vsel %vm660_vm11, %v902_v31, 0.0  ;;  %v938_v50 = vrot.slane %v924_v33, %v1652_v30  ;;  %v1067_v57 = vsel %vm660_vm11, %v903_v49, 0.0  ;;  %v898_v11 = vrot.slane %v884_v46, %v1659_v37 }
 0x45d   :  { %v971_v25 = vcombine.low %v915_v4, %v931_v63  ;;  %v972_v35 = vcombine.high %v915_v4, %v931_v63  ;;  %v1073_v3 = vsel %vm660_vm11, %v904_v60, 0.0 }
 0x45e   :  { %v987_v62 = vcombine.low %v922_v14, %v938_v50  ;;  %v905_v6 = vcombine.low %v866_v61, %v898_v11  ;;  %v906_v59 = vcombine.high %v866_v61, %v898_v11 }
 0x45f   :  { %v979_v47 = vrot.slane %v971_v25, %v1659_v37  ;;  %v986_v52 = vrot.slane %v972_v35, %v1659_v37 }
 0x460   :  { %v769_v23 = vpop.permute.xlu0 %768  ;;  %1050 = vadd.xlane.f32.xlu0 %v1049_v19  ;;  %v995_v9 = vrot.slane %v987_v62, %v1659_v37  ;;  %v1079_v12 = vsel %vm660_vm11, %v905_v6, 0.0  ;;  %v1085_v4 = vsel %vm660_vm11, %v906_v59, 0.0 }
 0x461   :  { %v955_v26 = vcombine.low %v763_v16, %v769_v23  ;;  %v956_v40 = vcombine.high %v763_v16, %v769_v23  ;;  %v988_v16 = vcombine.high %v922_v14, %v938_v50 }
 0x463   :  { %v963_v29 = vrot.slane %v955_v26, %v1652_v30  ;;  %v970_v24 = vrot.slane %v956_v40, %v1652_v30  ;;  %v1002_v53 = vrot.slane %v988_v16, %v1659_v37 }
 0x464   :  { %1056 = vadd.xlane.f32.xlu0 %v1055_v5 }
 0x465   :  { %v1003_v43 = vcombine.low %v947_v27, %v963_v29  ;;  %v1004_v42 = vcombine.high %v947_v27, %v963_v29  ;;  %v1019_v1 = vcombine.low %v954_v51, %v970_v24  ;;  %v1020_v63 = vcombine.high %v954_v51, %v970_v24 }
 0x467   :  { %v1011_v34 = vrot.slane %v1003_v43, %v1659_v37  ;;  %v1018_v56 = vrot.slane %v1004_v42, %v1659_v37  ;;  %v1027_v10 = vrot.slane %v1019_v1, %v1659_v37  ;;  %v1034_v18 = vrot.slane %v1020_v63, %v1659_v37 }
 0x468   :  { %1062 = vadd.xlane.f32.xlu0 %v1061_v48 }
 0x469   :  { %v1035_v54 = vcombine.low %v979_v47, %v1011_v34  ;;  %v1036_v55 = vcombine.high %v979_v47, %v1011_v34  ;;  %v1037_v30 = vcombine.low %v986_v52, %v1018_v56  ;;  %v1038_v8 = vcombine.high %v986_v52, %v1018_v56 }
 0x46a   :  { %v1039_v13 = vcombine.low %v995_v9, %v1027_v10  ;;  %v1040_v20 = vcombine.high %v995_v9, %v1027_v10  ;;  %v1041_v21 = vcombine.low %v1002_v53, %v1034_v18  ;;  %v1042_v23 = vcombine.high %v1002_v53, %v1034_v18 }
 0x46b   :  { %v1046_v58 = vsel %vm660_vm11, %v1035_v54, 0.0  ;;  %v1052_v2 = vsel %vm660_vm11, %v1036_v55, 0.0  ;;  %v1058_v7 = vsel %vm660_vm11, %v1037_v30, 0.0  ;;  %v1064_v0 = vsel %vm660_vm11, %v1038_v8, 0.0 }
 0x46c   :  { %1068 = vadd.xlane.f32.xlu0 %v1067_v57  ;;  %1047 = vadd.xlane.f32.xlu1 %v1046_v58  ;;  %v1070_v17 = vsel %vm660_vm11, %v1039_v13, 0.0  ;;  %v1076_v19 = vsel %vm660_vm11, %v1040_v20, 0.0  ;;  %v1082_v22 = vsel %vm660_vm11, %v1041_v21, 0.0  ;;  %v1088_v25 = vsel %vm660_vm11, %v1042_v23, 0.0 }
 0x470   :  { %1074 = vadd.xlane.f32.xlu0 %v1073_v3  ;;  %1053 = vadd.xlane.f32.xlu1 %v1052_v2 }
 0x474   :  { %1080 = vadd.xlane.f32.xlu0 %v1079_v12  ;;  %1059 = vadd.xlane.f32.xlu1 %v1058_v7 }
 0x478   :  { %1086 = vadd.xlane.f32.xlu0 %v1085_v4  ;;  %1065 = vadd.xlane.f32.xlu1 %v1064_v0 }
 0x47c   :  { %1071 = vadd.xlane.f32.xlu1 %v1070_v17 }
 0x480   :  { %1077 = vadd.xlane.f32.xlu1 %v1076_v19 }
 0x484   :  { %1083 = vadd.xlane.f32.xlu1 %v1082_v22 }
 0x488   :  { %1089 = vadd.xlane.f32.xlu1 %v1088_v25 }
 0x4d8   :  { %v1339_v26 = vpop.xlane.xlu1 %1338 }
 0x4d9   :  { %vm1343_vm5 = vcmp.eq.f32.partialorder %v1822_v36, %v1339_v26 }
 0x4da   :  { %v1345_v27 = vsel %vm1343_vm5, %v1588_v15, 8 }
 0x4db   :  { %v1892_v28 = vsel %vm181_vm2, %v1345_v27, 2147483647 }
 0x4dc   :  { %v1342_v37 = vpop.xlane.xlu0 %1341  ;;  %v1349_v29 = vshra.s32 %v1892_v28, 16 }
 0x4dd   :  { %vm1344_vm6 = vcmp.eq.f32.partialorder %v1831_v45, %v1342_v37 }
 0x4de   :  { %v1346_v5 = vsel %vm1344_vm6, %v1588_v15, 8  ;;  %v1897_v31 = vcvt.s32.f32 %v1349_v29 }
 0x4df   :  { %v1900_v32 = vsel %vm181_vm2, %v1346_v5, 2147483647 }
 0x4e0   :  { %1352 = vmin.xlane.f32.xlu0 %v1897_v31  ;;  %v1364_v36 = vshra.s32 %v1900_v32, 16 }
 0x4e2   :  { %v1904_v33 = vcvt.s32.f32 %v1364_v36 }
 0x4e4   :  { %1367 = vmin.xlane.f32.xlu1 %v1904_v33 }
 0x4e9   :  { %v1045_v35 = vpop.xlane.xlu0 %1044 }
 0x4ea   :  { %v1091_v46 = vmul.f32 0.70710677, %v1045_v35 }
 0x4ec   :  { %v1118_v24 = vrot.slane %v1091_v46, %v1773_v44 }
 0x4ed   :  { %v1051_v38 = vpop.xlane.xlu0 %1050 }
 0x4ee   :  { %v1093_v15 = vmul.f32 0.70710677, %v1051_v38 }
 0x4f0   :  { %v1122_v34 = vrot.slane %v1093_v15, %v1773_v44  ;;  %v1363_v15 = vand.u32 65535, %v1900_v32 }
 0x4f1   :  { %v1057_v39 = vpop.xlane.xlu0 %1056 }
 0x4f2   :  { %v1095_v42 = vmul.f32 0.70710677, %v1057_v39  ;;  %v1148_v57 = vsel %vm1147_vm13, %v1122_v34, %v1118_v24  ;;  %v1365_v46 = vcvt.s32.f32 %v1363_v15 }
 0x4f4   :  { %v1126_v50 = vrot.slane %v1095_v42, %v1773_v44 }
 0x4f5   :  { %v1063_v40 = vpop.xlane.xlu0 %1062 }
 0x4f6   :  { %v1097_v48 = vmul.f32 0.70710677, %v1063_v40  ;;  %v1150_v60 = vsel %vm1149_vm14, %v1126_v50, %v1148_v57  ;;  %v1348_v40 = vand.u32 65535, %v1892_v28 }
 0x4f8   :  { %v1130_v54 = vrot.slane %v1097_v48, %v1773_v44 }
 0x4f9   :  { %v1069_v45 = vpop.xlane.xlu0 %1068  ;;  %v1048_v43 = vpop.xlane.xlu1 %1047 }
 0x4fa   :  { %v1099_v49 = vmul.f32 0.70710677, %v1069_v45  ;;  %v1152_v1 = vsel %vm1151_vm15, %v1130_v54, %v1150_v60  ;;  %v1092_v2 = vmul.f32 0.70710677, %v1048_v43  ;;  %v1350_v43 = vcvt.s32.f32 %v1348_v40 }
 0x4fc   :  { %v1134_v56 = vrot.slane %v1099_v49, %v1773_v44  ;;  %v1224_v59 = vrot.slane %v1092_v2, %v1773_v44 }
 0x4fd   :  { %v1075_v47 = vpop.xlane.xlu0 %1074  ;;  %v1054_v14 = vpop.xlane.xlu1 %1053 }
 0x4fe   :  { %v1101_v41 = vmul.f32 0.70710677, %v1075_v47  ;;  %v1094_v30 = vmul.f32 0.70710677, %v1054_v14  ;;  %v1154_v6 = vsel %vm1153_vm0, %v1134_v56, %v1152_v1 }
 0x500   :  { %v1138_v58 = vrot.slane %v1101_v41, %v1773_v44  ;;  %v1228_v0 = vrot.slane %v1094_v30, %v1773_v44 }
 0x501   :  { %v1081_v51 = vpop.xlane.xlu0 %1080  ;;  %v1060_v52 = vpop.xlane.xlu1 %1059 }
 0x502   :  { %v1103_v55 = vmul.f32 0.70710677, %v1081_v51  ;;  %v1156_v7 = vsel %vm1155_vm1, %v1138_v58, %v1154_v6  ;;  %v1096_v10 = vmul.f32 0.70710677, %v1060_v52  ;;  %v1253_v17 = vsel %vm1147_vm13, %v1228_v0, %v1224_v59 }
 0x504   :  { %v1142_v11 = vrot.slane %v1103_v55, %v1773_v44  ;;  %v1232_v63 = vrot.slane %v1096_v10, %v1773_v44 }
 0x505   :  { %v1087_v61 = vpop.xlane.xlu0 %1086  ;;  %v1066_v62 = vpop.xlane.xlu1 %1065 }
 0x506   :  { %v1105_v3 = vmul.f32 0.70710677, %v1087_v61  ;;  %v1158_v9 = vsel %vm1157_vm3, %v1142_v11, %v1156_v7  ;;  %v1098_v16 = vmul.f32 0.70710677, %v1066_v62  ;;  %v1254_v19 = vsel %vm1149_vm14, %v1232_v63, %v1253_v17 }
 0x508   :  { %v1146_v8 = vrot.slane %v1105_v3, %v1773_v44  ;;  %v1236_v53 = vrot.slane %v1098_v16, %v1773_v44 }
 0x509   :  { %v1072_v12 = vpop.xlane.xlu1 %1071 }
 0x50a   :  { %v1160_v13 = vsel %vm1159_vm4, %v1146_v8, %v1158_v9  ;;  %v1100_v20 = vmul.f32 0.70710677, %v1072_v12  ;;  %v1255_v25 = vsel %vm1151_vm15, %v1236_v53, %v1254_v19 }
 0x50b   :  { %1162 = vst.msk [vmem:[%s1974_s5] sm:$0xff] %vm181_vm2, %v1160_v13 }
 0x50c   :  { %v1240_v23 = vrot.slane %v1100_v20, %v1773_v44 }
 0x50d   :  { %v1078_v4 = vpop.xlane.xlu1 %1077 }
 0x50e   :  { %v1102_v18 = vmul.f32 0.70710677, %v1078_v4  ;;  %v1256_v5 = vsel %vm1153_vm0, %v1240_v23, %v1255_v25 }
 0x510   :  { %v1244_v26 = vrot.slane %v1102_v18, %v1773_v44 }
 0x511   :  { %v1084_v21 = vpop.xlane.xlu1 %1083 }
 0x512   :  { %v1104_v22 = vmul.f32 0.70710677, %v1084_v21  ;;  %v1257_v36 = vsel %vm1155_vm1, %v1244_v26, %v1256_v5  ;;  %v1313_v47 = vld [vmem:[%s1974_s5] sm:$0xff] }
 0x513   :  { %v1317_v48 = vsel %vm181_vm2, %v1313_v47, -inf }
 0x514   :  { %v1248_v27 = vrot.slane %v1104_v22, %v1773_v44 }
 0x515   :  { %v1090_v37 = vpop.xlane.xlu1 %1089 }
 0x516   :  { %v1106_v29 = vmul.f32 0.70710677, %v1090_v37  ;;  %v1258_v38 = vsel %vm1157_vm3, %v1248_v27, %v1257_v36 }
 0x518   :  { %v1252_v35 = vrot.slane %v1106_v29, %v1773_v44 }
 0x51a   :  { %v1259_v39 = vsel %vm1159_vm4, %v1252_v35, %v1258_v38 }
 0x51b   :  { %1416 = vst.msk [vmem:[%s1974_s5 + $0x8] sm:$0xff] %vm181_vm2, %v1259_v39 }
 0x522   :  { %v1314_v28 = vld [vmem:[%s1974_s5 + $0x8] sm:$0xff] }
 0x56d   :  { %v1353_v45 = vpop.xlane.xlu0 %1352 }
 0x56e   :  { %vm1354_vm7 = vcmp.eq.f32.partialorder %v1897_v31, %v1353_v45  ;;  %v1320_v31 = vsel %vm181_vm2, %v1314_v28, -inf  ;;  %v1359_v32 = vcvt.f32.s32 %v1353_v45 }
 0x56f   :  { %v1355_v42 = vsel %vm1354_vm7, %v1350_v43, inf }
 0x570   :  { %1356 = vmin.xlane.f32.xlu0 %v1355_v42  ;;  %v1360_v41 = vshll.u32 %v1359_v32, 16 }
 0x571   :  { %v1368_v14 = vpop.xlane.xlu1 %1367 }
 0x572   :  { %vm1369_vm8 = vcmp.eq.f32.partialorder %v1904_v33, %v1368_v14  ;;  %v1374_v50 = vcvt.f32.s32 %v1368_v14 }
 0x573   :  { %v1370_v49 = vsel %vm1369_vm8, %v1365_v46, inf }
 0x574   :  { %1318 = vmax.xlane.f32.xlu0 %v1317_v48  ;;  %1371 = vmin.xlane.f32.xlu1 %v1370_v49  ;;  %v1375_v33 = vshll.u32 %v1374_v50, 16 }
 0x578   :  { %1321 = vmax.xlane.f32.xlu1 %v1320_v31 }
 0x5fd   :  { %v1357_v34 = vpop.xlane.xlu0 %1356 }
 0x5fe   :  { %v1358_v51 = vcvt.f32.s32 %v1357_v34 }
 0x600   :  { %v1361_v52 = vadd.s32 %v1360_v41, %v1358_v51 }
 0x601   :  { %v1372_v24 = vpop.xlane.xlu1 %1371  ;;  %v1319_v55 = vpop.xlane.xlu0 %1318 }
 0x602   :  { %v1373_v54 = vcvt.f32.s32 %v1372_v24  ;;  %v1377_v56 = vcvt.s32.f32 %v1361_v52  ;;  %v1328_v60 = vrot.slane %v1319_v55, %v1773_v44 }
 0x604   :  { %v1376_v57 = vadd.s32 %v1375_v33, %v1373_v54  ;;  %v1384_v62 = vrot.slane %v1377_v56, %v1773_v44 }
 0x605   :  { %v1322_v58 = vpop.xlane.xlu1 %1321 }
 0x606   :  { %v1378_v11 = vcvt.s32.f32 %v1376_v57  ;;  %v1332_v61 = vrot.slane %v1322_v58, %v1773_v44 }
 0x608   :  { %v1388_v1 = vrot.slane %v1378_v11, %v1773_v44  ;;  %v1333_v2 = vsel %vm1147_vm13, %v1332_v61, %v1328_v60 }
 0x609   :  { %1336 = vst.msk [vmem:[%s1975_s6] sm:$0x3] %vm1335_vm9, %v1333_v2 }
 0x60a   :  { %v1389_v30 = vsel %vm1147_vm13, %v1388_v1, %v1384_v62 }
 0x60b   :  { %1420 = vst.msk [vmem:[%s1975_s6 + $0x2] sm:$0x3] %vm1335_vm9, %v1389_v30 }

// kernel: residual_attention_forward.3
= control target key start
LH: loop header
LB: loop body
LE: loop exit
PB: predicated region body
PF: predicated region fallthrough
CT: control target
= control target key end

     0   :  { %v1987_v0 = vmov 0.0   ;;  %vm1988_vm0 = vmmov 0   ;;  %vm68_vm1 = vcmask 523264   ;;  %vm157_vm2 = vcmask 64512   ;;  %s1991_s27 = smov 124   ;;  %s1992_s28 = smov 126   ;;  %s2383_s2 = inlined_call_operand.vmem [shape: bf16[64,32], index: 2, kind: input, shape index: {}]   ;;  %s2384_s0 = inlined_call_operand.vmem [shape: f32[2,2,64], index: 0, kind: input, shape index: {}]   ;;  %s2385_s3 = inlined_call_operand.vmem [shape: f32[8,32], index: 3, kind: input, shape index: {}]   ;;  %s2386_s1 = inlined_call_operand.vmem [shape: f32[2,2,8], index: 1, kind: input, shape index: {}]   ;;  %s2387_s4 = inlined_call_operand.vmem [shape: f32[8,32], index: 4, kind: input, shape index: {}]   ;;  %s2388_s5 = inlined_call_operand.vmem [shape: bf16[32,64], index: 5, kind: input, shape index: {}]   ;;  %s2389_s6 = inlined_call_operand.vmem [shape: f32[2,64], index: 6, kind: input, shape index: {}]   ;;  %s2390_s7 = inlined_call_operand.vmem [shape: f32[2,32], index: 7, kind: output, shape index: {0}]   ;;  %s2391_s8 = inlined_call_operand.vmem [shape: f32[2,8], index: 8, kind: output, shape index: {1}]  }
   0x1   :  { %1787 = vmatprep.subr.bf16.mxu1 %v1987_v0  ;;  %v1963_v1 = vld [vmem:[%s2383_s2] sm:$0xff]   ;;  %1775 = vmatprep.subr.bf16.mxu0 %v1987_v0  ;;  %v1964_v2 = vld [vmem:[%s2383_s2 + $0x8] sm:$0xff]   ;;  %v1965_v3 = vld [vmem:[%s2383_s2 + $0x10] sm:$0xff]   ;;  %v445_v12 = vlaneseq  ;;  %v1989_v20 = vmov 0.0|0.0   ;;  %v1990_v24 = vmov 1.0|1.0  }
   0x2   :  { %1795 = vmatprep.mubr.msk.bf16.mxu1 %vm1988_vm0, %v1987_v0  ;;  %1783 = vmatprep.mubr.msk.bf16.mxu0 %vm1988_vm0, %v1987_v0  ;;  %v1966_v4 = vld [vmem:[%s2383_s2 + $0x18] sm:$0xff]   ;;  %v2097_v5 = vld [vmem:[%s2384_s0 + $0x2] sm:$0x3]  ;;  %v2102_v6 = vld [vmem:[%s2384_s0] sm:$0x3]  ;;  %s1994_s29 = smov 118  }
   0x3   :  { %1788 = vmatpush3.bf16.msra.mxu1 %v1963_v1  ;;  %1776 = vmatpush3.bf16.msra.mxu0 %v1963_v1  ;;  %v112_v7 = vpack.c.bf16 %v2097_v5, %v2097_v5  ;;  %v43_v8 = vpack.c.bf16 %v2102_v6, %v2102_v6  ;;  %v156_v9 = vld [vmem:[%s2385_s3] sm:$0xff]  ;;  %v2133_v13 = vand.u32 127, %v445_v12  ;;  %v2135_v14 = vshrl.u32 %v445_v12, 7  ;;  %s1995_s30 = smov 120   ;;  %s1996_s9 = smov 114  }
   0x4   :  { %1789 = vmatprep.subr.bf16.mxu1 %v1987_v0  ;;  %1777 = vmatprep.subr.bf16.mxu0 %v1987_v0  ;;  %v32_v10 = vld [vmem:[%s2386_s1] sm:$0x3]  ;;  %v1672_v11 = vld [vmem:[%s2386_s1 + $0x2] sm:$0x3]  ;;  %s1997_s10 = smov 116   ;;  %s1998_s11 = smov 110  }
   0x5   :  { %v457_v15 = vadd.s32 1, %v2133_v13  ;;  %v447_v16 = vadd.s32 8, %v2135_v14  ;;  %v452_v17 = vmul.u32 16, %v2133_v13  ;;  %v304_v19 = vld [vmem:[%s2387_s4] sm:$0xff]  ;;  %v448_v21 = vadd.s32 16, %v2135_v14  ;;  %s1999_s12 = smov 112  }
   0x6   :  { %v449_v22 = vadd.s32 24, %v2135_v14  ;;  %v475_v46 = vmul.u32 16, %v2135_v14  ;;  %v477_v47 = vadd.s32 1, %v2135_v14  ;;  %s2000_s13 = smov 106   ;;  %s2001_s14 = smov 108  }
   0x7   :  { %1790 = vmatpush3.bf16.msra.mxu1 %v1964_v2  ;;  %1778 = vmatpush3.bf16.msra.mxu0 %v1964_v2  ;;  %v458_v18 = vmul.u32 16, %v457_v15  ;;  %vm453_vm3 = vcmp.ge.s32.totalorder %v2135_v14, %v452_v17  ;;  %vm454_vm4 = vcmp.ge.s32.totalorder %v447_v16, %v452_v17  ;;  %vm455_vm10 = vcmp.ge.s32.totalorder %v448_v21, %v452_v17  ;;  %s2002_s15 = smov 102   ;;  %s2003_s16 = smov 104  }
   0x8   :  { %1791 = vmatprep.subr.bf16.mxu1 %v1987_v0  ;;  %1779 = vmatprep.subr.bf16.mxu0 %v1987_v0  ;;  %vm456_vm11 = vcmp.ge.s32.totalorder %v449_v22, %v452_v17  ;;  %v478_v48 = vmul.u32 16, %v477_v47  ;;  %s2004_s2 = smov 98   ;;  %s2005_s17 = smov 100  }
   0x9   :  { %vm459_vm5 = vcmp.lt.s32.totalorder %v2135_v14, %v458_v18  ;;  %vm460_vm6 = vcmp.lt.s32.totalorder %v447_v16, %v458_v18  ;;  %vm461_vm12 = vcmp.lt.s32.totalorder %v448_v21, %v458_v18  ;;  %vm462_vm13 = vcmp.lt.s32.totalorder %v449_v22, %v458_v18  ;;  %s2006_s0 = smov 94   ;;  %s2007_s18 = smov 96  }
   0xa   :  { %vm463_vm7 = vmand %vm453_vm3, %vm459_vm5  ;;  %vm476_vm3 = vcmp.ge.s32.totalorder %v2133_v13, %v475_v46  ;;  %vm655_vm5 = vcmask 1041408   ;;  %s2008_s3 = smov 90   ;;  %s2009_s19 = smov 92  }
   0xb   :  { %1792 = vmatpush3.bf16.msra.mxu1 %v1965_v3  ;;  %1780 = vmatpush3.bf16.msra.mxu0 %v1965_v3  ;;  %vm464_vm8 = vmand %vm454_vm4, %vm460_vm6  ;;  %vm479_vm4 = vcmp.lt.s32.totalorder %v2133_v13, %v478_v48  ;;  %s2010_s1 = smov 86   ;;  %s2011_s20 = smov 88  }
   0xc   :  { %1793 = vmatprep.subr.bf16.mxu1 %v1987_v0  ;;  %1781 = vmatprep.subr.bf16.mxu0 %v1987_v0  ;;  %vm2149_vm9 = vmpackc.low %vm464_vm8, %vm463_vm7  ;;  %vm651_vm7 = vcmask 15360   ;;  %vm861_vm8 = vcmask 517120   ;;  %s2012_s4 = smov 82   ;;  %s2013_s21 = smov 84  }
   0xd   :  { %vm465_vm14 = vmand %vm455_vm10, %vm461_vm12  ;;  %s2014_s22 = smov 78   ;;  %s2015_s23 = smov 80   ;;  %vm1614_vm10 = vcmask 195712   ;;  %vm1642_vm12 = vcmask 1041409  }
   0xe   :  { %vm466_vm15 = vmand %vm456_vm11, %vm462_vm13  ;;  %s2017_s24 = smov 76   ;;  %s2018_s25 = smov 70   ;;  %vm1621_vm11 = vcmask 261312   ;;  %vm1657_vm13 = vcmask 31744  }
   0xf   :  { %1794 = vmatpush3.bf16.msra.mxu1 %v1966_v4  ;;  %1782 = vmatpush3.bf16.msra.mxu0 %v1966_v4  ;;  %vm480_vm6 = vmand %vm476_vm3, %vm479_vm4  ;;  %v1967_v4 = vld [vmem:[%s2388_s5] sm:$0xff]   ;;  %s2019_s26 = smov 72  }
  0x10   :  { %1799 = vmatprep.subr.mxu1 %v1987_v0  ;;  %1809 = vmatprep.subr.mxu0 %v1987_v0  ;;  %v2196_v49 = vsel %vm480_vm6, 1.0, %v1987_v0 }
  0x12   :  { %1796 = vmatmul.mubr.msk.bf16.vlgmr.msra.gmra.mrb[0].mxu1 %vm68_vm1, %v112_v7  ;;  %1784 = vmatmul.mubr.msk.bf16.vlgmr.msra.gmra.mrb[0].mxu0 %vm68_vm1, %v43_v8  ;;  %vm2165_vm1 = vmpackc.low %vm466_vm15, %vm465_vm14  ;;  %v1968_v7 = vld [vmem:[%s2388_s5 + $0x8] sm:$0xff]   ;;  %s2016_s5 = smov 74   ;;  %vm1659_vm14 = vcmask 48128   ;;  %vm1645_vm15 = vcmask 254976  }
  0x13   :  { %1800 = vmatpush3.msra.mxu1 %v156_v9  ;;  %1801 = vmatprep.mubr.msk.f32.mxu1 %vm1988_vm0, %v1987_v0 }
  0x14   :  { %1804 = vmatprep.subr.mxu1 %v1987_v0  ;;  %1811 = vmatprep.mubr.msk.f32.mxu0 %vm1988_vm0, %v1987_v0 }
  0x15   :  { %1810 = vmatpush3.msra.mxu0 %v304_v19 }
  0x16   :  { %1899 = vmatprep.subr.bf16.mxu0 %v1989_v20 }
  0x1a   :  { %1802 = vmatmul.mubr.msk.f32.vlgmr.msra.gmra.mrb[4].mxu1 %vm157_vm2, %v32_v10  ;;  %1812 = vmatmul.mubr.msk.f32.vlgmr.msra.gmra.mrb[4].mxu0 %vm157_vm2, %v32_v10 }
  0x1b   :  { %1805 = vmatpush3.msra.mxu1 %v156_v9  ;;  %1806 = vmatprep.mubr.msk.f32.mxu1 %vm1988_vm0, %v1987_v0 }
  0x1c   :  { %1814 = vmatprep.subr.mxu1 %v1987_v0  ;;  %1901 = vmatpush3.bf16.msk.msra.mxu0 %vm2149_vm9, %v1990_v24 }
  0x1d   :  { %1902 = vmatprep.subr.bf16.mxu0 %v1989_v20  ;;  %1827 = vmatprep.mubr.msk.f32.mxu0 %vm1988_vm0, %v1987_v0 }
  0x1e   :  { %1807 = vmatmul.mubr.msk.f32.vlgmr.msra.gmra.mrb[6].mxu1 %vm157_vm2, %v1672_v11 }
  0x1f   :  { %1816 = vmatprep.mubr.msk.f32.mxu1 %vm1988_vm0, %v1987_v0  ;;  %1815 = vmatpush3.msra.mxu1 %v304_v19 }
  0x20   :  { %1905 = vmatprep.subr.bf16.mxu1 %v1989_v20  ;;  %1904 = vmatpush3.bf16.msk.msra.mxu0 %vm2165_vm1, %v1990_v24 }
  0x21   :  { %1841 = vmatprep.subr.mxu0 %v1987_v0 }
  0x22   :  { %1817 = vmatmul.mubr.msk.f32.vlgmr.msra.gmra.mrb[8].mxu1 %vm157_vm2, %v1672_v11  ;;  %vm490_vm2 = vcmask 261120  }
  0x23   :  { %1907 = vmatpush3.bf16.msk.msra.mxu1 %vm2149_vm9, %v1990_v24  ;;  %1838 = vmatprep.mubr.msk.f32.mxu1 %vm1988_vm0, %v1987_v0 }
  0x24   :  { %1908 = vmatprep.subr.bf16.mxu1 %v1989_v20 }
  0x27   :  { %1910 = vmatpush3.bf16.msk.msra.mxu1 %vm2165_vm1, %v1990_v24 }
  0x28   :  { %1846 = vmatprep.subr.mxu1 %v1987_v0 }
  0xe5   :  { %v150_v26 = vpop.f32.mrb[0].mxu1  ;;  %v106_v27 = vpop.f32.mrb[0].mxu0 }
  0xe6   :  { %v1797_v28 = vpop.f32.mrb[1].mxu1  ;;  %v1785_v29 = vpop.f32.mrb[1].mxu0 }
  0xe7   :  { %v153_v30 = vpop.f32.mrb[2].mxu1  ;;  %v109_v31 = vpop.f32.mrb[2].mxu0 }
  0xe8   :  { %v1798_v32 = vpop.f32.mrb[3].mxu1  ;;  %v1786_v33 = vpop.f32.mrb[3].mxu0 }
  0xed   :  { %v227_v34 = vpop.f32.mrb[4].mxu1  ;;  %v2187_v42 = vpop.f32.mrb[4].mxu0 }
  0xee   :  { %v489_v35 = vmul.f32 %v227_v34, %v106_v27  ;;  %v886_v36 = vmul.f32 %v227_v34, %v150_v26  ;;  %v1803_v37 = vpop.f32.mrb[5].mxu1  ;;  %v1813_v44 = vpop.f32.mrb[5].mxu0 }
  0xf0   :  { %1828 = vmatmul.mubr.msk.f32.vlgmr.msra.gmra.mrb[6].mxu0 %vm490_vm2, %v489_v35 }
  0xf1   :  { %v300_v38 = vpop.f32.mrb[6].mxu1  ;;  %1843 = vmatprep.mubr.msk.f32.mxu0 %vm1988_vm0, %v1987_v0  ;;  %1842 = vmatpush3.msk.msra.mxu0 %vm655_vm5, %v2196_v49 }
  0xf2   :  { %v565_v39 = vmul.f32 %v300_v38, %v106_v27  ;;  %v2182_v40 = vmul.f32 %v300_v38, %v150_v26  ;;  %v1808_v41 = vpop.f32.mrb[7].mxu1  ;;  %1851 = vmatprep.subr.bf16.mxu0 %v1987_v0 }
  0xf4   :  { %1839 = vmatmul.mubr.msk.f32.vlgmr.msra.gmra.mrb[10].mxu1 %vm490_vm2, %v565_v39 }
  0xf5   :  { %1848 = vmatprep.mubr.msk.f32.mxu1 %vm1988_vm0, %v1987_v0  ;;  %v2189_v43 = vpop.f32.mrb[8].mxu1  ;;  %1847 = vmatpush3.msk.msra.mxu1 %vm655_vm5, %v2196_v49 }
  0xf6   :  { %v1818_v45 = vpop.f32.mrb[9].mxu1  ;;  %1911 = vmatprep.subr.bf16.mxu1 %v1989_v20 }
 0x1c3   :  { %v560_v50 = vpop.f32.mrb[6].mxu0 }
 0x1c4   :  { %v1829_v51 = vpop.f32.mrb[7].mxu0  ;;  %v564_v53 = vmul.f32 0.25, %v560_v50 }
 0x1c7   :  { %v635_v52 = vpop.f32.mrb[10].mxu1 }
 0x1c8   :  { %v639_v54 = vmul.f32 0.25, %v635_v52  ;;  %v1840_v55 = vpop.f32.mrb[11].mxu1 }
 0x1ca   :  { %v640_v56 = vmax.f32 %v564_v53, %v639_v54 }
 0x1cc   :  { %v641_v57 = vsub.f32 %v564_v53, %v640_v56  ;;  %v644_v58 = vsub.f32 %v639_v54, %v640_v56 }
 0x1ce   :  { %v642_v59 = vmul.f32 1.442695, %v641_v57  ;;  %v645_v60 = vmul.f32 1.442695, %v644_v58 }
 0x1d0   :  { %1969 = vpow2.f32 %v642_v59 }
 0x1d1   :  { %1971 = vpow2.f32 %v645_v60 }
 0x1da   :  { %v1970_v61 = vpop.eup %1969 }
 0x1db   :  { %v1972_v62 = vpop.eup %1971 }
 0x1dc   :  { %v647_v63 = vadd.f32 %v1972_v62, %v1970_v61 }
 0x1de   :  { %1973 = vrcp.f32 %v647_v63 }
 0x1e8   :  { %v1974_v1 = vpop.eup %1973 }
 0x1e9   :  { %v2204_v2 = vmul.f32 %v1974_v1, %v1970_v61  ;;  %v2206_v3 = vmul.f32 %v1974_v1, %v1972_v62 }
 0x1eb   :  { %1844 = vmatmul.mubr.msk.f32.vlgmr.msra.gmra.mrb[8].mxu0 %vm651_vm7, %v2204_v2  ;;  %1849 = vmatmul.mubr.msk.f32.vlgmr.msra.gmra.mrb[12].mxu1 %vm651_vm7, %v2206_v3 }
 0x1ec   :  { %1913 = vmatpush3.bf16.msk.msra.mxu1 %vm2149_vm9, %v1990_v24  ;;  %1867 = vmatprep.mubr.msk.f32.mxu1 %vm1988_vm0, %v1987_v0 }
 0x1ed   :  { %1914 = vmatprep.subr.bf16.mxu1 %v1989_v20  ;;  %1855 = vmatprep.mubr.msk.bf16.mxu0 %vm1988_vm0, %v1987_v0 }
 0x1ee   :  { %1852 = vmatpush3.bf16.msra.mxu0 %v1967_v4 }
 0x1ef   :  { %1853 = vmatprep.subr.bf16.mxu0 %v1987_v0 }
 0x1f0   :  { %1916 = vmatpush3.bf16.msk.msra.mxu1 %vm2165_vm1, %v1990_v24 }
 0x1f1   :  { %1881 = vmatprep.subr.mxu1 %v1987_v0 }
 0x1f2   :  { %1854 = vmatpush3.bf16.msra.mxu0 %v1968_v7 }
 0x1f3   :  { %1868 = vmatmul.mubr.msk.f32.vlgmr.msra.gmra.mrb[14].mxu1 %vm490_vm2, %v886_v36  ;;  %1917 = vmatprep.subr.bf16.mxu0 %v1989_v20 }
 0x1f4   :  { %1882 = vmatpush3.msk.msra.mxu1 %vm655_vm5, %v2196_v49  ;;  %1883 = vmatprep.mubr.msk.f32.mxu1 %vm1988_vm0, %v1987_v0 }
 0x1f5   :  { %1886 = vmatprep.subr.mxu1 %v1987_v0 }
 0x2be   :  { %v725_v8 = vpop.f32.mrb[8].mxu0  ;;  %v799_v9 = vpop.f32.mrb[12].mxu1 }
 0x2bf   :  { %v729_v10 = vmul.f32 %v725_v8, %v2187_v42  ;;  %v803_v11 = vmul.f32 %v799_v9, %v2189_v43  ;;  %v1845_v12 = vpop.f32.mrb[9].mxu0  ;;  %v1850_v15 = vpop.f32.mrb[13].mxu1 }
 0x2c1   :  { %v804_v16 = vadd.f32 %v803_v11, %v729_v10  ;;  %v1705_v11 = vld [vmem:[%s2389_s6] ss:$0 sm:$0xff] }
 0x2c3   :  { %v805_v17 = vpack.c.bf16 %v804_v16, %v804_v16 }
 0x2c5   :  { %1856 = vmatmul.mubr.msk.bf16.vlgmr.msra.gmra.mrb[12].mxu0 %vm490_vm2, %v805_v17  ;;  %v1706_v17 = vld [vmem:[%s2389_s6 + $0x1] ss:$0 sm:$0xff]  ;;  %s1993_s6 = smov 122  }
 0x2c6   :  { %v956_v18 = vpop.f32.mrb[14].mxu1  ;;  %1919 = vmatpush3.bf16.msk.msra.mxu0 %vm2149_vm9, %v1990_v24  ;;  %1878 = vmatprep.mubr.msk.f32.mxu0 %vm1988_vm0, %v1987_v0  ;;  %vm1607_vm9 = vcmask 130112  }
 0x2c7   :  { %v1869_v19 = vpop.f32.mrb[15].mxu1  ;;  %1920 = vmatprep.subr.bf16.mxu0 %v1989_v20  ;;  %v960_v27 = vmul.f32 0.25, %v956_v18 }
 0x2ca   :  { %1922 = vmatpush3.bf16.msk.msra.mxu0 %vm2165_vm1, %v1990_v24  ;;  %vm1661_vm1 = vcmask 58368  }
 0x2cb   :  { %1891 = vmatprep.subr.bf16.mxu0 %v1987_v0 }
 0x2cd   :  { %1879 = vmatmul.mubr.msk.f32.vlgmr.msra.gmra.mrb[10].mxu0 %vm490_vm2, %v2182_v40 }
 0x2ce   :  { %1892 = vmatpush3.bf16.msra.mxu0 %v1967_v4  ;;  %1895 = vmatprep.mubr.msk.bf16.mxu0 %vm1988_vm0, %v1987_v0 }
 0x2cf   :  { %1893 = vmatprep.subr.bf16.mxu0 %v1987_v0 }
 0x2d2   :  { %1894 = vmatpush3.bf16.msra.mxu0 %v1968_v7 }
 0x398   :  { %v855_v21 = vpop.f32.mrb[12].mxu0 }
 0x399   :  { %v856_v20 = vadd.f32 %v855_v21, %v2102_v6  ;;  %v1857_v22 = vpop.f32.mrb[13].mxu0 }
 0x39a   :  { %v858_v23 = vpop.f32.mrb[14].mxu0 }
 0x39b   :  { %v1858_v25 = vpop.f32.mrb[15].mxu0  ;;  %v862_v24 = vsel %vm861_vm8, %v856_v20, 0.0 }
 0x39c   :  { %863 = vadd.xlane.f32.xlu0 %v862_v24 }
 0x3a0   :  { %v1031_v26 = vpop.f32.mrb[10].mxu0 }
 0x3a1   :  { %v1035_v28 = vmul.f32 0.25, %v1031_v26  ;;  %v1880_v29 = vpop.f32.mrb[11].mxu0 }
 0x3a3   :  { %v1036_v30 = vmax.f32 %v960_v27, %v1035_v28 }
 0x3a5   :  { %v1037_v31 = vsub.f32 %v960_v27, %v1036_v30  ;;  %v1040_v32 = vsub.f32 %v1035_v28, %v1036_v30 }
 0x3a7   :  { %v1038_v33 = vmul.f32 1.442695, %v1037_v31  ;;  %v1041_v34 = vmul.f32 1.442695, %v1040_v32  ;;  %v2023_v31 = vmov 1983009808  }
 0x3a8   :  { %v1360_v32 = vunpack.c.l.s4 %v2023_v31 }
 0x3a9   :  { %1975 = vpow2.f32 %v1038_v33 }
 0x3aa   :  { %1977 = vpow2.f32 %v1041_v34 }
 0x3b3   :  { %v1976_v35 = vpop.eup %1975 }
 0x3b4   :  { %v1978_v36 = vpop.eup %1977 }
 0x3b5   :  { %v1043_v6 = vadd.f32 %v1978_v36, %v1976_v35 }
 0x3b7   :  { %1979 = vrcp.f32 %v1043_v6  ;;  %v2024_v6 = vmov 1934713408  }
 0x3c1   :  { %v1980_v37 = vpop.eup %1979 }
 0x3c2   :  { %v2258_v38 = vmul.f32 %v1980_v37, %v1976_v35  ;;  %v2260_v39 = vmul.f32 %v1980_v37, %v1978_v36  ;;  %v1361_v35 = vunpack.c.0.s8 %v1360_v32  ;;  %v1392_v37 = vunpack.c.l.s4 %v2024_v6 }
 0x3c4   :  { %1884 = vmatmul.mubr.msk.f32.vlgmr.msra.gmra.mrb[16].mxu1 %vm651_vm7, %v2258_v38 }
 0x3c5   :  { %1887 = vmatpush3.msk.msra.mxu1 %vm655_vm5, %v2196_v49  ;;  %1888 = vmatprep.mubr.msk.f32.mxu1 %vm1988_vm0, %v1987_v0 }
 0x3c8   :  { %1889 = vmatmul.mubr.msk.f32.vlgmr.msra.gmra.mrb[18].mxu1 %vm651_vm7, %v2260_v39 }
 0x429   :  { %v864_v40 = vpop.xlane.xlu0 %863 }
 0x42a   :  { %v866_v41 = vmul.f32 0.015625, %v864_v40 }
 0x42c   :  { %v867_v44 = vsub.f32 %v856_v20, %v866_v41 }
 0x42e   :  { %v868_v45 = vmul.f32 %v867_v44, %v867_v44 }
 0x430   :  { %v869_v46 = vsel %vm861_vm8, %v868_v45, 0.0 }
 0x431   :  { %870 = vadd.xlane.f32.xlu1 %v869_v46 }
 0x497   :  { %v1116_v47 = vpop.f32.mrb[16].mxu1 }
 0x498   :  { %v1120_v48 = vmul.f32 %v1116_v47, %v2187_v42  ;;  %v1885_v50 = vpop.f32.mrb[17].mxu1  ;;  %v1393_v47 = vunpack.c.0.s8 %v1392_v37 }
 0x49b   :  { %v1190_v51 = vpop.f32.mrb[18].mxu1 }
 0x49c   :  { %v1194_v49 = vmul.f32 %v1190_v51, %v2189_v43  ;;  %v1890_v52 = vpop.f32.mrb[19].mxu1 }
 0x49e   :  { %v1195_v53 = vadd.f32 %v1194_v49, %v1120_v48 }
 0x4a0   :  { %v1196_v0 = vpack.c.bf16 %v1195_v53, %v1195_v53 }
 0x4a2   :  { %1896 = vmatmul.mubr.msk.bf16.vlgmr.msra.gmra.mrb[16].mxu0 %vm490_vm2, %v1196_v0 }
 0x4be   :  { %v871_v63 = vpop.xlane.xlu1 %870 }
 0x4bf   :  { %v872_v1 = vmul.f32 0.015625, %v871_v63 }
 0x4c1   :  { %v873_v4 = vadd.f32 1e-06, %v872_v1 }
 0x4c3   :  { %1981 = vrsqrt.f32 %v873_v4 }
 0x4cd   :  { %v1982_v9 = vpop.eup %1981 }
 0x4ce   :  { %v875_v10 = vmul.f32 %v1982_v9, %v867_v44  ;;  %v2318_v44 = vsub.s32 %v1361_v35, %v2135_v14 }
 0x4d0   :  { %v880_v15 = vmul.f32 %v1705_v11, %v875_v10 }
 0x4d2   :  { %v885_v19 = vadd.f32 %v1706_v17, %v880_v15 }
 0x575   :  { %v1234_v54 = vpop.f32.mrb[16].mxu0 }
 0x576   :  { %v1235_v55 = vadd.f32 %v2097_v5, %v1234_v54  ;;  %v1897_v56 = vpop.f32.mrb[17].mxu0  ;;  %v2326_v54 = vsub.s32 %v1393_v47, %v2135_v14 }
 0x577   :  { %v1237_v57 = vpop.f32.mrb[18].mxu0 }
 0x578   :  { %v1898_v58 = vpop.f32.mrb[19].mxu0  ;;  %v1240_v59 = vsel %vm861_vm8, %v1235_v55, 0.0 }
 0x579   :  { %1241 = vadd.xlane.f32.xlu0 %v1240_v59 }
 0x606   :  { %v1242_v60 = vpop.xlane.xlu0 %1241 }
 0x607   :  { %v1243_v42 = vmul.f32 0.015625, %v1242_v60 }
 0x609   :  { %v1244_v61 = vsub.f32 %v1235_v55, %v1243_v42 }
 0x60b   :  { %v1245_v62 = vmul.f32 %v1244_v61, %v1244_v61 }
 0x60d   :  { %v1246_v43 = vsel %vm861_vm8, %v1245_v62, 0.0 }
 0x60e   :  { %1247 = vadd.xlane.f32.xlu1 %v1246_v43 }
 0x69b   :  { %v1248_v7 = vpop.xlane.xlu1 %1247 }
 0x69c   :  { %v1249_v8 = vmul.f32 0.015625, %v1248_v7 }
 0x69e   :  { %v1250_v5 = vadd.f32 1e-06, %v1249_v8 }
 0x6a0   :  { %1983 = vrsqrt.f32 %v1250_v5 }
 0x6aa   :  { %v1984_v12 = vpop.eup %1983 }
 0x6ab   :  { %v1252_v16 = vmul.f32 %v1984_v12, %v1244_v61 }
 0x6ad   :  { %v1253_v18 = vmul.f32 %v1705_v11, %v1252_v16 }
 0x6af   :  { %v1254_v21 = vadd.f32 %v1706_v17, %v1253_v18 }
 0x6b1   :  { %v1255_v20 = vadd.f32 %v1254_v21, %v885_v19 }
 0x6b3   :  { %v1257_v22 = vmin.f32 %v1255_v20, 0.0  ;;  %vm1256_vm0 = vcmp.gt.f32.partialorder %v1255_v20, 0.0 }
 0x6b5   :  { %v1258_v23 = vmul.f32 1.442695, %v1257_v22 }
 0x6b7   :  { %1985 = vpow2.f32 %v1258_v23 }
 0x6c1   :  { %v1986_v25 = vpop.eup %1985 }
 0x6c2   :  { %v1722_v24 = vadd.f32 -1.0, %v1986_v25 }
 0x6c4   :  { %v1261_v26 = vmul.f32 1.6732632, %v1722_v24 }
 0x6c6   :  { %v1262_v27 = vsel %vm1256_vm0, %v1255_v20, %v1261_v26 }
 0x6c7   :  { %v2283_v28 = vmul.f32 1.050701, %v1262_v27 }
 0x6c9   :  { %1268 = vrot.lane.b32.xlu1 %v2283_v28, %s1991_s27  ;;  %1265 = vrot.lane.b32.xlu0 %v2283_v28, %s1992_s28  ;;  %s2020_s27 = smov 66   ;;  %s2021_s28 = smov 68  }
 0x6cd   :  { %1271 = vrot.lane.b32.xlu1 %v2283_v28, %s1993_s6  ;;  %1277 = vrot.lane.b32.xlu0 %v2283_v28, %s1994_s29  ;;  %s2022_s6 = smov 2   ;;  %s2025_s29 = smov 6  }
 0x6d1   :  { %1274 = vrot.lane.b32.xlu1 %v2283_v28, %s1995_s30  ;;  %1283 = vrot.lane.b32.xlu0 %v2283_v28, %s1996_s9  ;;  %s2026_s30 = smov 4  }
 0x6d5   :  { %1280 = vrot.lane.b32.xlu1 %v2283_v28, %s1997_s10  ;;  %1289 = vrot.lane.b32.xlu0 %v2283_v28, %s1998_s11 }
 0x6d9   :  { %1286 = vrot.lane.b32.xlu1 %v2283_v28, %s1999_s12  ;;  %1295 = vrot.lane.b32.xlu0 %v2283_v28, %s2000_s13 }
 0x6dd   :  { %1292 = vrot.lane.b32.xlu1 %v2283_v28, %s2001_s14  ;;  %1301 = vrot.lane.b32.xlu0 %v2283_v28, %s2002_s15 }
 0x6e1   :  { %1298 = vrot.lane.b32.xlu1 %v2283_v28, %s2003_s16  ;;  %1307 = vrot.lane.b32.xlu0 %v2283_v28, %s2004_s2 }
 0x6e5   :  { %1304 = vrot.lane.b32.xlu1 %v2283_v28, %s2005_s17  ;;  %1313 = vrot.lane.b32.xlu0 %v2283_v28, %s2006_s0 }
 0x6e9   :  { %1310 = vrot.lane.b32.xlu1 %v2283_v28, %s2007_s18  ;;  %1319 = vrot.lane.b32.xlu0 %v2283_v28, %s2008_s3 }
 0x6ed   :  { %1316 = vrot.lane.b32.xlu1 %v2283_v28, %s2009_s19  ;;  %1325 = vrot.lane.b32.xlu0 %v2283_v28, %s2010_s1 }
 0x6f1   :  { %1322 = vrot.lane.b32.xlu1 %v2283_v28, %s2011_s20  ;;  %1331 = vrot.lane.b32.xlu0 %v2283_v28, %s2012_s4 }
 0x6f5   :  { %1328 = vrot.lane.b32.xlu1 %v2283_v28, %s2013_s21  ;;  %1337 = vrot.lane.b32.xlu0 %v2283_v28, %s2014_s22 }
 0x6f9   :  { %1334 = vrot.lane.b32.xlu1 %v2283_v28, %s2015_s23  ;;  %1343 = vrot.lane.b32.xlu0 %v2283_v28, %s2016_s5 }
 0x6fd   :  { %1340 = vrot.lane.b32.xlu1 %v2283_v28, %s2017_s24  ;;  %1349 = vrot.lane.b32.xlu0 %v2283_v28, %s2018_s25 }
 0x701   :  { %1346 = vrot.lane.b32.xlu1 %v2283_v28, %s2019_s26  ;;  %1355 = vrot.lane.b32.xlu0 %v2283_v28, %s2020_s27 }
 0x705   :  { %1352 = vrot.lane.b32.xlu1 %v2283_v28, %s2021_s28 }
 0x709   :  { %1647 = vrot.lane.b32.xlu1 %v2206_v3, %s2022_s6 }
 0x73b   :  { %v1269_v29 = vpop.permute.xlu1 %1268  ;;  %v1266_v30 = vpop.permute.xlu0 %1265 }
 0x73c   :  { %v1358_v45 = vcombine.low %v2283_v28, %v1269_v29 }
 0x73e   :  { %v1365_v51 = vrot.slane %v1358_v45, %v2318_v44 }
 0x73f   :  { %v1272_v33 = vpop.permute.xlu1 %1271  ;;  %v1278_v34 = vpop.permute.xlu0 %1277 }
 0x740   :  { %v1366_v36 = vcombine.low %v1266_v30, %v1272_v33 }
 0x742   :  { %v1373_v46 = vrot.slane %v1366_v36, %v2318_v44 }
 0x743   :  { %v1275_v40 = vpop.permute.xlu1 %1274  ;;  %v1284_v41 = vpop.permute.xlu0 %1283 }
 0x744   :  { %v1382_v3 = vcombine.low %v1278_v34, %v1284_v41  ;;  %v1390_v52 = vcombine.low %v1365_v51, %v1373_v46 }
 0x746   :  { %v1389_v53 = vrot.slane %v1382_v3, %v2318_v44  ;;  %v1397_v58 = vrot.slane %v1390_v52, %v2326_v54 }
 0x747   :  { %v1281_v48 = vpop.permute.xlu1 %1280  ;;  %v1290_v50 = vpop.permute.xlu0 %1289 }
 0x748   :  { %v1374_v49 = vcombine.low %v1275_v40, %v1281_v48 }
 0x74a   :  { %v1381_v0 = vrot.slane %v1374_v49, %v2318_v44 }
 0x74b   :  { %v1287_v55 = vpop.permute.xlu1 %1286  ;;  %v1296_v56 = vpop.permute.xlu0 %1295 }
 0x74c   :  { %v1398_v57 = vcombine.low %v1381_v0, %v1389_v53  ;;  %v1416_v4 = vcombine.low %v1290_v50, %v1296_v56 }
 0x74e   :  { %v1405_v59 = vrot.slane %v1398_v57, %v2326_v54  ;;  %v1423_v10 = vrot.slane %v1416_v4, %v2318_v44 }
 0x74f   :  { %v1293_v60 = vpop.permute.xlu1 %1292  ;;  %v1302_v42 = vpop.permute.xlu0 %1301 }
 0x750   :  { %v1406_v61 = vcombine.low %v1397_v58, %v1405_v59  ;;  %v1408_v62 = vcombine.low %v1287_v55, %v1293_v60  ;;  %v1407_v27 = vcombine.high %v1397_v58, %v1405_v59 }
 0x752   :  { %v1558_v43 = vsel %vm651_vm7, %v1406_v61, 0.0  ;;  %v1415_v7 = vrot.slane %v1408_v62, %v2318_v44  ;;  %v1570_v33 = vsel %vm651_vm7, %v1407_v27, 0.0 }
 0x753   :  { %v1299_v63 = vpop.permute.xlu1 %1298  ;;  %1559 = vadd.xlane.f32.xlu1 %v1558_v43  ;;  %v1308_v1 = vpop.permute.xlu0 %1307 }
 0x754   :  { %v1432_v8 = vcombine.low %v1302_v42, %v1308_v1  ;;  %v1440_v12 = vcombine.low %v1415_v7, %v1423_v10 }
 0x756   :  { %v1439_v15 = vrot.slane %v1432_v8, %v2318_v44  ;;  %v1447_v21 = vrot.slane %v1440_v12, %v2326_v54 }
 0x757   :  { %v1305_v5 = vpop.permute.xlu1 %1304  ;;  %v1314_v9 = vpop.permute.xlu0 %1313 }
 0x758   :  { %v1424_v11 = vcombine.low %v1299_v63, %v1305_v5 }
 0x75a   :  { %v1431_v16 = vrot.slane %v1424_v11, %v2318_v44 }
 0x75b   :  { %v1311_v17 = vpop.permute.xlu1 %1310  ;;  %v1320_v18 = vpop.permute.xlu0 %1319 }
 0x75c   :  { %v1448_v19 = vcombine.low %v1431_v16, %v1439_v15  ;;  %v1466_v30 = vcombine.low %v1314_v9, %v1320_v18 }
 0x75e   :  { %v1455_v20 = vrot.slane %v1448_v19, %v2326_v54  ;;  %v1473_v6 = vrot.slane %v1466_v30, %v2318_v44 }
 0x75f   :  { %v1317_v22 = vpop.permute.xlu1 %1316  ;;  %v1326_v23 = vpop.permute.xlu0 %1325 }
 0x760   :  { %v1456_v25 = vcombine.low %v1447_v21, %v1455_v20  ;;  %v1458_v24 = vcombine.low %v1311_v17, %v1317_v22  ;;  %v1457_v34 = vcombine.high %v1447_v21, %v1455_v20  ;;  %v1609_v21 = vadd.s32 4294967280, %v2133_v13 }
 0x762   :  { %v1561_v26 = vsel %vm651_vm7, %v1456_v25, 0.0  ;;  %v1465_v31 = vrot.slane %v1458_v24, %v2318_v44  ;;  %v1573_v46 = vsel %vm651_vm7, %v1457_v34, 0.0 }
 0x763   :  { %v1323_v28 = vpop.permute.xlu1 %1322  ;;  %1562 = vadd.xlane.f32.xlu0 %v1561_v26  ;;  %v1332_v29 = vpop.permute.xlu0 %1331  ;;  %v1612_v26 = vsub.s32 %v1609_v21, %v2135_v14 }
 0x764   :  { %v1482_v32 = vcombine.low %v1326_v23, %v1332_v29  ;;  %v1490_v40 = vcombine.low %v1465_v31, %v1473_v6 }
 0x766   :  { %v1489_v41 = vrot.slane %v1482_v32, %v2318_v44  ;;  %v1497_v50 = vrot.slane %v1490_v40, %v2326_v54 }
 0x767   :  { %v1329_v35 = vpop.permute.xlu1 %1328  ;;  %1571 = vadd.xlane.f32.xlu0 %v1570_v33  ;;  %v1338_v36 = vpop.permute.xlu0 %1337 }
 0x768   :  { %v1474_v37 = vcombine.low %v1323_v28, %v1329_v35  ;;  %v1600_v28 = vsub.s32 %v2133_v13, %v2135_v14 }
 0x76a   :  { %v1481_v45 = vrot.slane %v1474_v37, %v2318_v44 }
 0x76b   :  { %v1335_v3 = vpop.permute.xlu1 %1334  ;;  %1574 = vadd.xlane.f32.xlu0 %v1573_v46  ;;  %v1344_v47 = vpop.permute.xlu0 %1343 }
 0x76c   :  { %v1498_v48 = vcombine.low %v1481_v45, %v1489_v41  ;;  %v1516_v60 = vcombine.low %v1338_v36, %v1344_v47 }
 0x76e   :  { %v1505_v51 = vrot.slane %v1498_v48, %v2326_v54  ;;  %v1523_v43 = vrot.slane %v1516_v60, %v2318_v44 }
 0x76f   :  { %v1341_v49 = vpop.permute.xlu1 %1340  ;;  %v1350_v52 = vpop.permute.xlu0 %1349 }
 0x770   :  { %v1507_v53 = vcombine.high %v1497_v50, %v1505_v51  ;;  %v1506_v0 = vcombine.low %v1497_v50, %v1505_v51  ;;  %v1508_v55 = vcombine.low %v1335_v3, %v1341_v49 }
 0x772   :  { %v1576_v56 = vsel %vm651_vm7, %v1507_v53, 0.0  ;;  %v1564_v57 = vsel %vm651_vm7, %v1506_v0, 0.0  ;;  %v1515_v42 = vrot.slane %v1508_v55, %v2318_v44 }
 0x773   :  { %v1347_v58 = vpop.permute.xlu1 %1346  ;;  %1577 = vadd.xlane.f32.xlu0 %v1576_v56  ;;  %1565 = vadd.xlane.f32.xlu1 %v1564_v57  ;;  %v1356_v59 = vpop.permute.xlu0 %1355 }
 0x774   :  { %v1532_v61 = vcombine.low %v1350_v52, %v1356_v59  ;;  %v1540_v1 = vcombine.low %v1515_v42, %v1523_v43 }
 0x776   :  { %v1539_v4 = vrot.slane %v1532_v61, %v2318_v44  ;;  %v1547_v5 = vrot.slane %v1540_v1, %v2326_v54 }
 0x777   :  { %v1353_v62 = vpop.permute.xlu1 %1352 }
 0x778   :  { %v1524_v63 = vcombine.low %v1347_v58, %v1353_v62 }
 0x77a   :  { %v1531_v7 = vrot.slane %v1524_v63, %v2318_v44 }
 0x77b   :  { %v1648_v17 = vpop.permute.xlu1 %1647 }
 0x77c   :  { %v1548_v8 = vcombine.low %v1531_v7, %v1539_v4  ;;  %v1656_v34 = vsel %vm651_vm7, %v2204_v2, %v1648_v17 }
 0x77e   :  { %v1555_v9 = vrot.slane %v1548_v8, %v2326_v54  ;;  %v1602_v54 = vadd.s32 4294967288, %v2133_v13 }
 0x780   :  { %v1557_v10 = vcombine.high %v1547_v5, %v1555_v9  ;;  %v1556_v11 = vcombine.low %v1547_v5, %v1555_v9  ;;  %v1605_v23 = vsub.s32 %v1602_v54, %v2135_v14 }
 0x782   :  { %v1579_v12 = vsel %vm651_vm7, %v1557_v10, 0.0  ;;  %v1567_v15 = vsel %vm651_vm7, %v1556_v11, 0.0 }
 0x783   :  { %1580 = vadd.xlane.f32.xlu0 %v1579_v12  ;;  %1568 = vadd.xlane.f32.xlu1 %v1567_v15 }
 0x794   :  { %1653 = vrot.lane.b32.xlu1 %v2260_v39, %s2025_s29  ;;  %v1616_v39 = vadd.s32 4294967272, %v2133_v13 }
 0x796   :  { %v1619_v33 = vsub.s32 %v1616_v39, %v2135_v14 }
 0x799   :  { %1650 = vrot.lane.b32.xlu0 %v2258_v38, %s2026_s30 }
 0x7e0   :  { %v1560_v18 = vpop.xlane.xlu1 %1559 }
 0x7e1   :  { %v1582_v29 = vmul.f32 0.70710677, %v1560_v18 }
 0x7e3   :  { %v1601_v40 = vrot.slane %v1582_v29, %v1600_v28 }
 0x7f0   :  { %v1563_v44 = vpop.xlane.xlu0 %1562 }
 0x7f1   :  { %v1583_v25 = vmul.f32 0.70710677, %v1563_v44 }
 0x7f3   :  { %v1606_v31 = vrot.slane %v1583_v25, %v1605_v23 }
 0x7f4   :  { %v1572_v16 = vpop.xlane.xlu0 %1571 }
 0x7f5   :  { %v1586_v30 = vmul.f32 0.70710677, %v1572_v16  ;;  %v1608_v13 = vsel %vm1607_vm9, %v1606_v31, %v1601_v40 }
 0x7f7   :  { %v1626_v41 = vrot.slane %v1586_v30, %v1600_v28 }
 0x7f8   :  { %v1575_v19 = vpop.xlane.xlu0 %1574 }
 0x7f9   :  { %v1587_v24 = vmul.f32 0.70710677, %v1575_v19 }
 0x7fb   :  { %v1630_v32 = vrot.slane %v1587_v24, %v1605_v23 }
 0x7fd   :  { %v1631_v14 = vsel %vm1607_vm9, %v1630_v32, %v1626_v41 }
 0x800   :  { %v1566_v20 = vpop.xlane.xlu1 %1565  ;;  %v1578_v22 = vpop.xlane.xlu0 %1577 }
 0x801   :  { %v1584_v38 = vmul.f32 0.70710677, %v1566_v20  ;;  %v1588_v27 = vmul.f32 0.70710677, %v1578_v22 }
 0x803   :  { %v1613_v35 = vrot.slane %v1584_v38, %v1612_v26  ;;  %v1635_v36 = vrot.slane %v1588_v27, %v1612_v26 }
 0x805   :  { %v1615_v2 = vsel %vm1614_vm10, %v1613_v35, %v1608_v13  ;;  %v1636_v48 = vsel %vm1614_vm10, %v1635_v36, %v1631_v14 }
 0x810   :  { %v1569_v6 = vpop.xlane.xlu1 %1568  ;;  %v1581_v37 = vpop.xlane.xlu0 %1580 }
 0x811   :  { %v1585_v45 = vmul.f32 0.70710677, %v1569_v6  ;;  %v1589_v46 = vmul.f32 0.70710677, %v1581_v37 }
 0x813   :  { %v1620_v3 = vrot.slane %v1585_v45, %v1619_v33  ;;  %v1640_v47 = vrot.slane %v1589_v46, %v1619_v33 }
 0x814   :  { %v1654_v50 = vpop.permute.xlu1 %1653  ;;  %v1651_v51 = vpop.permute.xlu0 %1650 }
 0x815   :  { %v1622_v49 = vsel %vm1621_vm11, %v1620_v3, %v1615_v2  ;;  %v1641_v52 = vsel %vm1621_vm11, %v1640_v47, %v1636_v48  ;;  %v1658_v53 = vsel %vm1657_vm13, %v1656_v34, %v1651_v51 }
 0x816   :  { %v1643_v0 = vsel %vm1642_vm12, %v1641_v52, %v1622_v49  ;;  %v1660_v55 = vsel %vm1659_vm14, %v1658_v53, %v1654_v50 }
 0x817   :  { %1646 = vst.msk [vmem:[%s2390_s7] sm:$0x3] %vm1645_vm15, %v1643_v0 }
 0x818   :  { %1662 = vst.msk [vmem:[%s2391_s8] sm:$0x3] %vm1661_vm1, %v1660_v55 }

</bundles_post_ra>
